<compile_context>
chip_gen: v7x
topology: tpu7x:2x2x1
jax: 0.10.0
libtpu: 0.0.40
codegen_flags: <defaults>
</compile_context>

<pallas_src>
import functools

import jax
import jax.numpy as jnp
import numpy as np
from jax.experimental import pallas as pl
from jax.experimental.pallas import tpu as pltpu

_HIGHEST = jax.lax.Precision.HIGHEST


def _irlb_kernel(x_ref, w1_ref, s1_ref, b1_ref, dw0_ref, dw1_ref,
                 s2_ref, b2_ref, w3_ref, s3_ref, b3_ref, *rest,
                 stride_h, residual):
    """One image per grid step. x_ref block: (1, Cin, H*W) — channel-major with
    the flattened spatial dim on the lane axis."""
    if stride_h == 1:
        shift_ref, o_ref = rest
    else:
        sel0_ref, sel1_ref, o_ref = rest

    x2 = x_ref[0]                                             # (Cin, HW)

    # ---- 1x1 expansion conv == MXU matmul, spatial (HW) on the lane axis ----
    y1 = jnp.dot(w1_ref[...], x2, precision=_HIGHEST,
                 preferred_element_type=jnp.float32)          # (Cmid, HW)
    y1 = jnp.clip(y1 * s1_ref[...] + b1_ref[...], 0.0, 6.0)   # BN1 + ReLU6

    # ---- depthwise (2,1) conv: per-channel blend of two row selections ----
    # Row shift (incl. reflection pad / stride-2 pairing) done as exact 0/1
    # selection matmuls -> no concat / reshape relayouts, stays lane-dense.
    if stride_h == 1:
        tap0 = y1                                             # identity selection
        tap1 = jnp.dot(y1, shift_ref[...], precision=_HIGHEST,
                       preferred_element_type=jnp.float32)    # next row / reflect
    else:
        tap0 = jnp.dot(y1, sel0_ref[...], precision=_HIGHEST,
                       preferred_element_type=jnp.float32)    # rows 2h
        tap1 = jnp.dot(y1, sel1_ref[...], precision=_HIGHEST,
                       preferred_element_type=jnp.float32)    # rows 2h+1
    y2 = tap0 * dw0_ref[...] + tap1 * dw1_ref[...]            # (Cmid, HWout)
    y2 = jnp.clip(y2 * s2_ref[...] + b2_ref[...], 0.0, 6.0)   # BN2 + ReLU6

    # ---- 1x1 pointwise conv == MXU matmul ----
    y3 = jnp.dot(w3_ref[...], y2, precision=_HIGHEST,
                 preferred_element_type=jnp.float32)          # (Cout, HWout)
    y3 = y3 * s3_ref[...] + b3_ref[...]                       # BN3, no activation

    if residual:                                              # Cin == Cout, stride 1
        y3 = y3 + x2

    o_ref[0] = y3                     # lane-dense store: last dim = HWout (256/128)


def _depthwise_selection_matrices(H, W, stride_h):
    """0/1 matrices S (HW, HWout) such that (y @ S)[c, h*W+w] picks the desired
    input row for each depthwise tap. Built once at trace time with numpy."""
    HW = H * W
    w_idx = np.arange(W)
    if stride_h == 1:
        H_out = H
        h_out = np.arange(H_out)
        # tap0 = identity (handled implicitly), tap1 = next row with reflection
        src1_h = np.where(h_out < H - 1, h_out + 1, H - 2)
        src0_h = None
    else:
        H_out = (H - 2) // 2 + 1
        h_out = np.arange(H_out)
        src0_h = 2 * h_out
        src1_h = 2 * h_out + 1

    out_flat = (h_out[:, None] * W + w_idx[None, :]).ravel()

    def build(src_rows):
        src_flat = (src_rows[:, None] * W + w_idx[None, :]).ravel()
        m = np.zeros((HW, H_out * W), np.float32)
        m[src_flat, out_flat] = 1.0
        return m

    sel0 = None if src0_h is None else build(src0_h)
    sel1 = build(src1_h)
    return sel0, sel1, H_out


def _full_spec(arr):
    nd = arr.ndim
    return pl.BlockSpec(arr.shape, lambda n, _nd=nd: (0,) * _nd)


def block_forward(x_nchw, params, *, size_reduction, in_channels, out_channels):
    """Pallas implementation of Block.forward. Input/output are NCHW (like PyTorch)."""
    x = x_nchw.astype(jnp.float32)
    N, Cin, H, W = x.shape
    assert Cin == in_channels
    stride_h = 2 if size_reduction == 1 else 1
    residual = (in_channels == out_channels) and (size_reduction == 0)

    sel0_np, sel1_np, H_out = _depthwise_selection_matrices(H, W, stride_h)
    HW, HWo = H * W, H_out * W

    w1, s1, b1, wdw, s2, b2, w3, s3, b3 = params
    col = lambda v: jnp.reshape(v, (-1, 1))

    # NCHW is contiguous -> flattening (H, W) is a free reshape (no HBM pass).
    x_flat = x.reshape(N, Cin, HW)

    sel_args = ((jnp.asarray(sel1_np),) if stride_h == 1
                else (jnp.asarray(sel0_np), jnp.asarray(sel1_np)))

    args = (x_flat, w1, col(s1), col(b1), col(wdw[0]), col(wdw[1]),
            col(s2), col(b2), w3, col(s3), col(b3)) + sel_args

    in_specs = [pl.BlockSpec((1, Cin, HW), lambda n: (n, 0, 0))]
    in_specs += [_full_spec(a) for a in args[1:]]

    kernel = functools.partial(_irlb_kernel, stride_h=stride_h, residual=residual)

    out = pl.pallas_call(
        kernel,
        out_shape=jax.ShapeDtypeStruct((N, out_channels, HWo), jnp.float32),
        grid=(N,),
        in_specs=in_specs,
        out_specs=pl.BlockSpec((1, out_channels, HWo), lambda n: (n, 0, 0)),
        compiler_params=pltpu.CompilerParams(dimension_semantics=("parallel",)),
    )(*args)

    # Free reshape back to NCHW spatial layout (no transpose needed).
    return out.reshape(N, out_channels, H_out, W)


def make_params(key, in_channels, out_channels):
    """Deterministic synthetic parameters (conv weights + folded BN affine)."""
    cmid = in_channels * 6
    ks = jax.random.split(key, 15)

    def bn_fold(kg, kb, km, kv, c):
        gamma = 1.0 + 0.1 * jax.random.normal(kg, (c,), jnp.float32)
        beta = 0.1 * jax.random.normal(kb, (c,), jnp.float32)
        mean = 0.1 * jax.random.normal(km, (c,), jnp.float32)
        var = jnp.abs(jax.random.normal(kv, (c,), jnp.float32)) + 0.5
        scale = gamma / jnp.sqrt(var + 1e-5)
        bias = beta - mean * scale
        return scale, bias

    w1 = 0.3 * jax.random.normal(ks[0], (cmid, in_channels), jnp.float32)    # expand 1x1 (out,in)
    wdw = 0.5 * jax.random.normal(ks[1], (2, cmid), jnp.float32)             # depthwise (2,1) taps
    w3 = 0.3 * jax.random.normal(ks[2], (out_channels, cmid), jnp.float32)   # pointwise 1x1 (out,in)

    s1, b1 = bn_fold(ks[3], ks[4], ks[5], ks[6], cmid)
    s2, b2 = bn_fold(ks[7], ks[8], ks[9], ks[10], cmid)
    s3, b3 = bn_fold(ks[11], ks[12], ks[13], ks[14], out_channels)
    return (w1, s1, b1, wdw, s2, b2, w3, s3, b3)


def block_reference(x_nchw, params, *, size_reduction, in_channels, out_channels):
    """Pure-JAX reference (same math, no Pallas), NCHW throughout."""
    x = x_nchw.astype(jnp.float32)
    w1, s1, b1, wdw, s2, b2, w3, s3, b3 = params
    bc = lambda v: v.reshape(1, -1, 1, 1)

    y1 = jnp.einsum('dc,nchw->ndhw', w1, x, precision=_HIGHEST)
    y1 = jnp.clip(y1 * bc(s1) + bc(b1), 0.0, 6.0)

    H = y1.shape[2]
    if size_reduction == 0:
        pad = y1[:, :, H - 2:H - 1]                                  # reflection pad bottom-1
        y1p = jnp.concatenate([y1, pad], axis=2)
        y2 = y1p[:, :, :H] * bc(wdw[0]) + y1p[:, :, 1:H + 1] * bc(wdw[1])
    else:
        H_out = (H - 2) // 2 + 1
        y2 = (y1[:, :, 0:2 * H_out:2] * bc(wdw[0])
              + y1[:, :, 1:2 * H_out:2] * bc(wdw[1]))
    y2 = jnp.clip(y2 * bc(s2) + bc(b2), 0.0, 6.0)

    y3 = jnp.einsum('dc,nchw->ndhw', w3, y2, precision=_HIGHEST)
    y3 = y3 * bc(s3) + bc(b3)
    if in_channels == out_channels and size_reduction == 0:
        y3 = y3 + x
    return y3


if __name__ == "__main__":
    key = jax.random.PRNGKey(0)
    k_x, k_p0, k_p1 = jax.random.split(key, 3)

    N, Cin, H, W = 2, 4, 16, 16
    x = jax.random.normal(k_x, (N, Cin, H, W), jnp.float32)   # NCHW, like PyTorch

    # Config A: size_reduction=0, Cin==Cout -> residual path, stride (1,1)
    params_a = make_params(k_p0, Cin, Cin)
    out_a = block_forward(x, params_a, size_reduction=0, in_channels=Cin, out_channels=Cin)
    out_a = jax.block_until_ready(out_a)
    ref_a = block_reference(x, params_a, size_reduction=0, in_channels=Cin, out_channels=Cin)

    # Config B: size_reduction=1, Cin != Cout -> downsample path, stride (2,1)
    Cout_b = 8
    params_b = make_params(k_p1, Cin, Cout_b)
    out_b = block_forward(x, params_b, size_reduction=1, in_channels=Cin, out_channels=Cout_b)
    out_b = jax.block_until_ready(out_b)
    ref_b = block_reference(x, params_b, size_reduction=1, in_channels=Cin, out_channels=Cout_b)

    assert out_a.shape == (N, Cin, H, W)
    assert out_b.shape == (N, Cout_b, H // 2, W)
    np.testing.assert_allclose(np.asarray(out_a), np.asarray(ref_a), rtol=1e-4, atol=1e-4)
    np.testing.assert_allclose(np.asarray(out_b), np.asarray(ref_b), rtol=1e-4, atol=1e-4)

    print("KERNEL_OK")
</pallas_src>

<mosaic_0001>
module attributes {stable_mosaic.version = 11 : i64} {
  func.func @_irlb_kernel(%arg0: i32, %arg1: memref<1x4x256xf32, #tpu.memory_space<vmem>>, %arg2: memref<24x4xf32, #tpu.memory_space<vmem>>, %arg3: memref<24x1xf32, #tpu.memory_space<vmem>>, %arg4: memref<24x1xf32, #tpu.memory_space<vmem>>, %arg5: memref<24x1xf32, #tpu.memory_space<vmem>>, %arg6: memref<24x1xf32, #tpu.memory_space<vmem>>, %arg7: memref<24x1xf32, #tpu.memory_space<vmem>>, %arg8: memref<24x1xf32, #tpu.memory_space<vmem>>, %arg9: memref<4x24xf32, #tpu.memory_space<vmem>>, %arg10: memref<4x1xf32, #tpu.memory_space<vmem>>, %arg11: memref<4x1xf32, #tpu.memory_space<vmem>>, %arg12: memref<256x256xf32, #tpu.memory_space<vmem>>, %arg13: memref<1x4x256xf32, #tpu.memory_space<vmem>>) attributes {dimension_semantics = [#tpu.dimension_semantics<parallel>], iteration_bounds = array<i64: 2>, scalar_prefetch = 0 : i64, scratch_operands = 0 : i64, tpu.core_type = #tpu.core_type<tc>, window_params = [{transform_indices = @transform_0, window_bounds = array<i64: 1, 4, 256>}, {pipeline_mode = #tpu.pipeline_mode<synchronous>, transform_indices = @transform_1, window_bounds = array<i64: 24, 4>}, {pipeline_mode = #tpu.pipeline_mode<synchronous>, transform_indices = @transform_2, window_bounds = array<i64: 24, 1>}, {pipeline_mode = #tpu.pipeline_mode<synchronous>, transform_indices = @transform_3, window_bounds = array<i64: 24, 1>}, {pipeline_mode = #tpu.pipeline_mode<synchronous>, transform_indices = @transform_4, window_bounds = array<i64: 24, 1>}, {pipeline_mode = #tpu.pipeline_mode<synchronous>, transform_indices = @transform_5, window_bounds = array<i64: 24, 1>}, {pipeline_mode = #tpu.pipeline_mode<synchronous>, transform_indices = @transform_6, window_bounds = array<i64: 24, 1>}, {pipeline_mode = #tpu.pipeline_mode<synchronous>, transform_indices = @transform_7, window_bounds = array<i64: 24, 1>}, {pipeline_mode = #tpu.pipeline_mode<synchronous>, transform_indices = @transform_8, window_bounds = array<i64: 4, 24>}, {pipeline_mode = #tpu.pipeline_mode<synchronous>, transform_indices = @transform_9, window_bounds = array<i64: 4, 1>}, {pipeline_mode = #tpu.pipeline_mode<synchronous>, transform_indices = @transform_10, window_bounds = array<i64: 4, 1>}, {pipeline_mode = #tpu.pipeline_mode<synchronous>, transform_indices = @transform_11, window_bounds = array<i64: 256, 256>}, {transform_indices = @transform_12, window_bounds = array<i64: 1, 4, 256>}]} {
    %c0 = arith.constant 0 : index
    %c0_0 = arith.constant 0 : index
    %c0_1 = arith.constant 0 : index
    %0 = vector.load %arg1[%c0, %c0_0, %c0_1] : memref<1x4x256xf32, #tpu.memory_space<vmem>>, vector<1x4x256xf32>
    %1 = vector.shape_cast %0 : vector<1x4x256xf32> to vector<4x256xf32>
    %c0_2 = arith.constant 0 : index
    %c0_3 = arith.constant 0 : index
    %2 = vector.load %arg2[%c0_2, %c0_3] : memref<24x4xf32, #tpu.memory_space<vmem>>, vector<24x4xf32>
    %cst = arith.constant dense<0.000000e+00> : vector<24x256xf32>
    %3 = tpu.matmul %2, %1, %cst {dimension_numbers = #tpu.dot_dimension_numbers<[1], [0], [0], [1], [0, 0, 1, 1], [], []>, precision = #tpu.contract_precision<fp32>} : vector<24x4xf32>, vector<4x256xf32>, vector<24x256xf32> -> vector<24x256xf32>
    %c0_4 = arith.constant 0 : index
    %c0_5 = arith.constant 0 : index
    %4 = vector.load %arg3[%c0_4, %c0_5] : memref<24x1xf32, #tpu.memory_space<vmem>>, vector<24x1xf32>
    %5 = vector.broadcast %4 : vector<24x1xf32> to vector<24x256xf32>
    %6 = arith.mulf %3, %5 : vector<24x256xf32>
    %c0_6 = arith.constant 0 : index
    %c0_7 = arith.constant 0 : index
    %7 = vector.load %arg4[%c0_6, %c0_7] : memref<24x1xf32, #tpu.memory_space<vmem>>, vector<24x1xf32>
    %8 = vector.broadcast %7 : vector<24x1xf32> to vector<24x256xf32>
    %9 = arith.addf %6, %8 : vector<24x256xf32>
    %cst_8 = arith.constant 0.000000e+00 : f32
    %cst_9 = arith.constant 6.000000e+00 : f32
    %10 = vector.broadcast %cst_8 : f32 to vector<24x256xf32>
    %11 = arith.maximumf %10, %9 : vector<24x256xf32>
    %12 = vector.broadcast %cst_9 : f32 to vector<24x256xf32>
    %13 = arith.minimumf %12, %11 : vector<24x256xf32>
    %c0_10 = arith.constant 0 : index
    %c0_11 = arith.constant 0 : index
    %14 = vector.load %arg12[%c0_10, %c0_11] : memref<256x256xf32, #tpu.memory_space<vmem>>, vector<256x256xf32>
    %cst_12 = arith.constant dense<0.000000e+00> : vector<24x256xf32>
    %15 = tpu.matmul %13, %14, %cst_12 {dimension_numbers = #tpu.dot_dimension_numbers<[1], [0], [0], [1], [0, 0, 1, 1], [], []>, precision = #tpu.contract_precision<fp32>} : vector<24x256xf32>, vector<256x256xf32>, vector<24x256xf32> -> vector<24x256xf32>
    %c0_13 = arith.constant 0 : index
    %c0_14 = arith.constant 0 : index
    %16 = vector.load %arg5[%c0_13, %c0_14] : memref<24x1xf32, #tpu.memory_space<vmem>>, vector<24x1xf32>
    %17 = vector.broadcast %16 : vector<24x1xf32> to vector<24x256xf32>
    %18 = arith.mulf %13, %17 : vector<24x256xf32>
    %c0_15 = arith.constant 0 : index
    %c0_16 = arith.constant 0 : index
    %19 = vector.load %arg6[%c0_15, %c0_16] : memref<24x1xf32, #tpu.memory_space<vmem>>, vector<24x1xf32>
    %20 = vector.broadcast %19 : vector<24x1xf32> to vector<24x256xf32>
    %21 = arith.mulf %15, %20 : vector<24x256xf32>
    %22 = arith.addf %18, %21 : vector<24x256xf32>
    %c0_17 = arith.constant 0 : index
    %c0_18 = arith.constant 0 : index
    %23 = vector.load %arg7[%c0_17, %c0_18] : memref<24x1xf32, #tpu.memory_space<vmem>>, vector<24x1xf32>
    %24 = vector.broadcast %23 : vector<24x1xf32> to vector<24x256xf32>
    %25 = arith.mulf %22, %24 : vector<24x256xf32>
    %c0_19 = arith.constant 0 : index
    %c0_20 = arith.constant 0 : index
    %26 = vector.load %arg8[%c0_19, %c0_20] : memref<24x1xf32, #tpu.memory_space<vmem>>, vector<24x1xf32>
    %27 = vector.broadcast %26 : vector<24x1xf32> to vector<24x256xf32>
    %28 = arith.addf %25, %27 : vector<24x256xf32>
    %cst_21 = arith.constant 0.000000e+00 : f32
    %cst_22 = arith.constant 6.000000e+00 : f32
    %29 = vector.broadcast %cst_21 : f32 to vector<24x256xf32>
    %30 = arith.maximumf %29, %28 : vector<24x256xf32>
    %31 = vector.broadcast %cst_22 : f32 to vector<24x256xf32>
    %32 = arith.minimumf %31, %30 : vector<24x256xf32>
    %c0_23 = arith.constant 0 : index
    %c0_24 = arith.constant 0 : index
    %33 = vector.load %arg9[%c0_23, %c0_24] : memref<4x24xf32, #tpu.memory_space<vmem>>, vector<4x24xf32>
    %cst_25 = arith.constant dense<0.000000e+00> : vector<4x256xf32>
    %34 = tpu.matmul %33, %32, %cst_25 {dimension_numbers = #tpu.dot_dimension_numbers<[1], [0], [0], [1], [0, 0, 1, 1], [], []>, precision = #tpu.contract_precision<fp32>} : vector<4x24xf32>, vector<24x256xf32>, vector<4x256xf32> -> vector<4x256xf32>
    %c0_26 = arith.constant 0 : index
    %c0_27 = arith.constant 0 : index
    %35 = vector.load %arg10[%c0_26, %c0_27] : memref<4x1xf32, #tpu.memory_space<vmem>>, vector<4x1xf32>
    %36 = vector.broadcast %35 : vector<4x1xf32> to vector<4x256xf32>
    %37 = arith.mulf %34, %36 : vector<4x256xf32>
    %c0_28 = arith.constant 0 : index
    %c0_29 = arith.constant 0 : index
    %38 = vector.load %arg11[%c0_28, %c0_29] : memref<4x1xf32, #tpu.memory_space<vmem>>, vector<4x1xf32>
    %39 = vector.broadcast %38 : vector<4x1xf32> to vector<4x256xf32>
    %40 = arith.addf %37, %39 : vector<4x256xf32>
    %41 = arith.addf %40, %1 : vector<4x256xf32>
    %c0_30 = arith.constant 0 : index
    %c0_31 = arith.constant 0 : index
    %c0_32 = arith.constant 0 : index
    %42 = vector.load %arg13[%c0_30, %c0_31, %c0_32] : memref<1x4x256xf32, #tpu.memory_space<vmem>>, vector<1x4x256xf32>
    %43 = vector.shape_cast %42 : vector<1x4x256xf32> to vector<4x256xf32>
    %44 = vector.shape_cast %41 : vector<4x256xf32> to vector<1x4x256xf32>
    tpu.vector_store %arg13[%c0_30, %c0_31, %c0_32], %44 {strides = array<i32>} : memref<1x4x256xf32, #tpu.memory_space<vmem>>, vector<1x4x256xf32>,
    return
  }
  func.func @transform_0(%arg0: i32) -> (i32, i32, i32) {
    %c0_i32 = arith.constant 0 : i32
    %c0_i32_0 = arith.constant 0 : i32
    %c0_i32_1 = arith.constant 0 : i32
    return %arg0, %c0_i32, %c0_i32_0 : i32, i32, i32
  }
  func.func @transform_1(%arg0: i32) -> (i32, i32) {
    %c0_i32 = arith.constant 0 : i32
    %c0_i32_0 = arith.constant 0 : i32
    %c0_i32_1 = arith.constant 0 : i32
    return %c0_i32, %c0_i32_0 : i32, i32
  }
  func.func @transform_2(%arg0: i32) -> (i32, i32) {
    %c0_i32 = arith.constant 0 : i32
    %c0_i32_0 = arith.constant 0 : i32
    %c0_i32_1 = arith.constant 0 : i32
    return %c0_i32, %c0_i32_0 : i32, i32
  }
  func.func @transform_3(%arg0: i32) -> (i32, i32) {
    %c0_i32 = arith.constant 0 : i32
    %c0_i32_0 = arith.constant 0 : i32
    %c0_i32_1 = arith.constant 0 : i32
    return %c0_i32, %c0_i32_0 : i32, i32
  }
  func.func @transform_4(%arg0: i32) -> (i32, i32) {
    %c0_i32 = arith.constant 0 : i32
    %c0_i32_0 = arith.constant 0 : i32
    %c0_i32_1 = arith.constant 0 : i32
    return %c0_i32, %c0_i32_0 : i32, i32
  }
  func.func @transform_5(%arg0: i32) -> (i32, i32) {
    %c0_i32 = arith.constant 0 : i32
    %c0_i32_0 = arith.constant 0 : i32
    %c0_i32_1 = arith.constant 0 : i32
    return %c0_i32, %c0_i32_0 : i32, i32
  }
  func.func @transform_6(%arg0: i32) -> (i32, i32) {
    %c0_i32 = arith.constant 0 : i32
    %c0_i32_0 = arith.constant 0 : i32
    %c0_i32_1 = arith.constant 0 : i32
    return %c0_i32, %c0_i32_0 : i32, i32
  }
  func.func @transform_7(%arg0: i32) -> (i32, i32) {
    %c0_i32 = arith.constant 0 : i32
    %c0_i32_0 = arith.constant 0 : i32
    %c0_i32_1 = arith.constant 0 : i32
    return %c0_i32, %c0_i32_0 : i32, i32
  }
  func.func @transform_8(%arg0: i32) -> (i32, i32) {
    %c0_i32 = arith.constant 0 : i32
    %c0_i32_0 = arith.constant 0 : i32
    %c0_i32_1 = arith.constant 0 : i32
    return %c0_i32, %c0_i32_0 : i32, i32
  }
  func.func @transform_9(%arg0: i32) -> (i32, i32) {
    %c0_i32 = arith.constant 0 : i32
    %c0_i32_0 = arith.constant 0 : i32
    %c0_i32_1 = arith.constant 0 : i32
    return %c0_i32, %c0_i32_0 : i32, i32
  }
  func.func @transform_10(%arg0: i32) -> (i32, i32) {
    %c0_i32 = arith.constant 0 : i32
    %c0_i32_0 = arith.constant 0 : i32
    %c0_i32_1 = arith.constant 0 : i32
    return %c0_i32, %c0_i32_0 : i32, i32
  }
  func.func @transform_11(%arg0: i32) -> (i32, i32) {
    %c0_i32 = arith.constant 0 : i32
    %c0_i32_0 = arith.constant 0 : i32
    %c0_i32_1 = arith.constant 0 : i32
    return %c0_i32, %c0_i32_0 : i32, i32
  }
  func.func @transform_12(%arg0: i32) -> (i32, i32, i32) {
    %c0_i32 = arith.constant 0 : i32
    %c0_i32_0 = arith.constant 0 : i32
    %c0_i32_1 = arith.constant 0 : i32
    return %arg0, %c0_i32, %c0_i32_0 : i32, i32, i32
  }
}

</mosaic_0001>

<bundles_post_ra>
// kernel: tpu_custom_call.1
= control target key start
LH: loop header
LB: loop body
LE: loop exit
PB: predicated region body
PF: predicated region fallthrough
CT: control target
= control target key end

     0   :  { %17 = vsyncpa [#allocation3], 0  ;;  %s5631_s0 = inlined_call_operand.vmem [shape: f32[2,4,256], index: 0, kind: input, shape index: {}]   ;;  %s5632_s1 = inlined_call_operand.vmem [shape: f32[24,4], index: 1, kind: input, shape index: {}]   ;;  %s5633_s2 = inlined_call_operand.vmem [shape: f32[24,1], index: 2, kind: input, shape index: {}]   ;;  %s5634_s3 = inlined_call_operand.vmem [shape: f32[24,1], index: 3, kind: input, shape index: {}]   ;;  %s5635_s4 = inlined_call_operand.vmem [shape: f32[24,1], index: 4, kind: input, shape index: {}]   ;;  %s5636_s5 = inlined_call_operand.vmem [shape: f32[24,1], index: 5, kind: input, shape index: {}]   ;;  %s5637_s6 = inlined_call_operand.vmem [shape: f32[24,1], index: 6, kind: input, shape index: {}]   ;;  %s5638_s7 = inlined_call_operand.vmem [shape: f32[24,1], index: 7, kind: input, shape index: {}]   ;;  %s5639_s8 = inlined_call_operand.vmem [shape: f32[4,24], index: 8, kind: input, shape index: {}]   ;;  %s5640_s9 = inlined_call_operand.vmem [shape: f32[4,1], index: 9, kind: input, shape index: {}]   ;;  %s5641_s10 = inlined_call_operand.vmem [shape: f32[4,1], index: 10, kind: input, shape index: {}]   ;;  %s5642_s11 = inlined_call_operand.hbm [shape: f32[256,256], index: 11, kind: input, shape index: {}]   ;;  %s5643_s12 = inlined_call_operand.hbm [shape: f32[2,4,256], index: 12, kind: output, shape index: {}]  }
   0x1   :  { %18 = vsyncpa [#allocation4], 0 }
   0x2   :  { %20 = vsyncpa [#allocation4 + $0x1], 0  ;;  %s4008_s21 = smov 0   ;;  %s4010_s22 = smov 0  }
   0x3   :  { %s4012_s23 = smov 0   ;;  %s4014_s24 = smov 0  }
   0x4 LB: > { %5908 = sst [smem:[#allocation8_spill]] %s3931_s23  ;;  %s4029_s25 = sadd.s32 4294967295, %s3935_s24   ;;  %s3935_s24 = sphi %s4014_s24, %s6358_s24   ;;  %s3931_s23 = sphi %s4012_s23, %s6355_s23   ;;  %s3927_s22 = sphi %s4010_s22, %s6357_s22   ;;  %s3923_s21 = sphi %s4008_s21, %s6356_s21  }
   0x5   : > { %s3289_s26 = sadd.s32 4294967294, %s3935_s24   ;;  %s4033_s27 = sadd.s32 1, %s3935_s24  }
   0x6   : > { %s290_s28 = sadd.s32 1, %s3931_s23  ;;  %s287_s29 = ssub.s32 %s3935_s24, %s4033_s27 }
   0x7   : > { %p300_p0 = scmp.ne.s32.totalorder %s3931_s23, %s3927_s22  ;;  %p288_p1 = scmp.eq.s32.totalorder %s287_s29, 0 }
   0x8   : > { %p301_p2 = scmp.eq.s32.totalorder %s4029_s25, 1  ;;  %p306_p3 = scmp.ne.s32.totalorder %s3927_s22, %s3923_s21 }
   0x9   : > { %p307_p4 = scmp.eq.s32.totalorder %s3289_s26, 1  ;;  %p3290_p7 = scmp.ge.s32.totalorder %s3935_s24, 1 }
   0xa   : > { %s4044_s30 = scalar_select %p288_p1, %s3931_s23, %s290_s28  }
   0xb   : > { %p4046_p5 = por %p301_p2, %p300_p0  ;;  %p4050_p6 = por %p307_p4, %p306_p3 }
   0xc   : > { %5909 = sst [smem:[#allocation9_spill]] %s4044_s30  ;;  %p314_p8 = scmp.lt.s32.totalorder %s3935_s24, 3 }
   0xd   : > { %s5910_s13 = scalar_select %p4046_p5, 1, 0 }
   0xe   : > { %s5911_s14 = scalar_select %p4050_p6, 1, 0 }
   0xf   : > { %p5645_p9 = scmp.eq.s32.totalorder %s4029_s25, 0  ;;  %p4057_p10 = pnand %p3290_p7, %p314_p8 }
  0x10   : > { %s3937_s16 = smov [#allocation2]   ;;  %s3841_s26 = scalar_lea.hbm %s5642_s11, 8192 }
  0x11   : > { %s5912_s15 = scalar_select %p4057_p10, 1, 0 }
  0x12   : > { %s356_s17 = sshll.u32 %s3937_s16, 4  ;;  %p3789_p11 = pneg %p4057_p10  ;;  %s357_s17 = int_to_ptr.vmem [resolvable:$true] %s356_s17 }
  0x13   : > { %p3842_p13 = scmp.ne.s32.totalorder %s5642_s11, %s3841_s26  ;;  %p3848_p3 = scmp.lt.u32.totalorder %s3841_s26, %s5642_s11 }
  0x14   : > { %p4065_p12 = pnand %p5645_p9, %p3789_p11 }
  0x16   : > { %p3843_p0 = pneg %p4065_p12 }
  0x18   : > { %p3844_p1 = pnand %p3843_p0, %p3842_p13 }
  0x1a   : > { %p3845_p2 = pneg %p3844_p1 }
  0x1c   : > { %p3850_p4 = pnand %p3848_p3, %p3845_p2 }
  0x1e   : > { %3853 = shalt.err (!%p3850_p4)
}
  0x1f   : > { %s3854_s23 = scalar_lea.vmem %s357_s17, 8192  ;;  %p3862_p9 = scmp.lt.s32.totalorder %s357_s17, %s357_s17 }
  0x20   : > { %p3855_p7 = scmp.ne.s32.totalorder %s357_s17, %s3854_s23  ;;  %p3863_p6 = scmp.lt.s32.totalorder %s3854_s23, %s3854_s23 }
  0x22   : > { %p3857_p8 = pnand %p3855_p7, %p3843_p0  ;;  %p3864_p5 = por %p3863_p6, %p3862_p9 }
  0x24   : > { %p3858_p11 = pneg %p3857_p8 }
  0x26   : > { %p3865_p10 = pnand %p3864_p5, %p3858_p11 }
  0x28   : > { %3868 = shalt.err (!%p3865_p10)
}
  0x29   : > { %s3938_s19 = smov 256   ;;  %s3939_s20 = smov 16  }
  0x2a   : > { %3792 = dma.hbm_to_vmem [thread:$0]  (!%p4065_p12), %s5642_s11, 8192, %s357_s17, [#allocation3], %s3938_s19, %s3938_s19, %s3939_s20  }
  0x2b   : > { %p5914_p13 = scmp.ne.s32.totalorder %s5912_s15, 0 }
  0x2d   : > { %380 = sbr.rel (%p5914_p13) target bundleno = 1065 (0x429), region = 68 }
  0x34   : > { %p5915_p1 = scmp.eq.s32.totalorder %s4029_s25, 0 }
  0x36   : > { %3914 = dma.done.wait (%p5915_p1), [#allocation3], 8192   ;;  %p5916_p0 = pmov %p5915_p1 }
  0x37   : > { %p422_p5 = scmp.lt.s32.totalorder %s4029_s25, 1  ;;  %v5671_v0 = vmov 0.0   ;;  %v3941_v1 = vmov 0   ;;  %vm443_vm0 = vcmask 1043456   ;;  %vm433_vm1 = vcmask 31744   ;;  %v428_v3 = vld [vmem:[%s5632_s1] sm:$0xff] }
  0x38   : > { %3916 = vsyncadd (%p5916_p0), [#allocation3], 4294959104  ;;  %514 = vmatprep.mubr.f32.mxu0 %v5671_v0  ;;  %3837 = vset.pattern.permute.xlu0 %v3941_v1  ;;  %v429_v4 = vld [vmem:[%s5632_s1 + $0x8] sm:$0xff]  ;;  %v435_v7 = vsel %vm433_vm1, %v428_v3, 0  ;;  %v430_v9 = vld [vmem:[%s5632_s1 + $0x10] sm:$0xff]  ;;  %vm2658_vm2 = vcmask 195584  }
  0x39   : > { %s423_s23 = scalar_select %p422_p5, %s4029_s25, 1  ;;  %3838 = vset.pattern.permute.xlu1 %v3941_v1  ;;  %v438_v8 = vsel %vm433_vm1, %v429_v4, 0  ;;  %v1011_v10 = vld [vmem:[%s5633_s2] sm:$0xff]  ;;  %v4117_v12 = vand.u32 4294901760, %v435_v7  ;;  %v441_v14 = vsel %vm433_vm1, %v430_v9, 0  ;;  %v1012_v23 = vld [vmem:[%s5633_s2 + $0x8] sm:$0xff] }
  0x3a   : > { %v4119_v13 = vand.u32 4294901760, %v438_v8  ;;  %1016 = vperm.xlu0 %3837, %v1011_v10   ;;  %v4123_v16 = vand.u32 4294901760, %v441_v14  ;;  %v1035_v17 = vld [vmem:[%s5634_s3] sm:$0xff]  ;;  %v1013_v29 = vld [vmem:[%s5633_s2 + $0x10] sm:$0xff]  ;;  %1021 = vperm.xlu1 %3838, %v1012_v23   ;;  %v1036_v34 = vld [vmem:[%s5634_s3 + $0x8] sm:$0xff]  ;;  %s419_s17 = sand.u32 1, %s3927_s22  }
  0x3b   : > { %s3303_s30 = sshll.u32 %s423_s23, 3  ;;  %v4134_v20 = vsub.f32 %v435_v7, %v4117_v12  ;;  %v4170_v35 = vld [vmem:[#allocation2 + $0x8] sm:$0xff]  ;;  %v4172_v36 = vld [vmem:[#allocation2 + $0x18] sm:$0xff]  ;;  %v4176_v39 = vld [vmem:[#allocation2] sm:$0xff]  ;;  %s3295_s15 = sshll.u32 %s419_s17, 3 }
  0x3c   : > { %s4097_s18 = scalar_lea.vmem %s5631_s0, %s3303_s30  ;;  %v4137_v21 = vsub.f32 %v438_v8, %v4119_v13  ;;  %v4140_v22 = vsub.f32 %v441_v14, %v4123_v16  ;;  %v5663_v37 = vand.u32 4294901760, %v4170_v35  ;;  %v5659_v38 = vand.u32 4294901760, %v4172_v36  ;;  %v4178_v40 = vld [vmem:[#allocation2 + $0x10] sm:$0xff]  ;;  %v4180_v41 = vld [vmem:[#allocation2 + $0x28] sm:$0xff]  ;;  %v4190_v46 = vld [vmem:[#allocation2 + $0x38] sm:$0xff]  ;;  %s3304_s26 = sshll.u32 %s4029_s25, 7 }
  0x3d   : > { %v427_v2 = vld [vmem:[%s4097_s18] sm:$0xff]  ;;  %v5667_v24 = vand.u32 4294901760, %v4134_v20  ;;  %v4194_v48 = vld [vmem:[#allocation2 + $0x30] sm:$0xff]  ;;  %v5658_v53 = vand.u32 4294901760, %v4176_v39  ;;  %v4210_v54 = vld [vmem:[#allocation2 + $0x48] sm:$0xff]  ;;  %v5657_v57 = vand.u32 4294901760, %v4178_v40  ;;  %s5589_s29 = scalar_lea.hbm %s5643_s12, %s3304_s26 }
  0x3e   : > { %v4106_v5 = vcombine.high %v427_v2, %v427_v2  ;;  %v444_v6 = vsel %vm443_vm0, %v427_v2, 0  ;;  %v5665_v25 = vand.u32 4294901760, %v4137_v21  ;;  %1040 = vperm.xlu0 %3837, %v1035_v17   ;;  %v5664_v28 = vand.u32 4294901760, %v4140_v22  ;;  %v4192_v47 = vld [vmem:[#allocation2 + $0x20] sm:$0xff]  ;;  %1045 = vperm.xlu1 %3838, %v1036_v34   ;;  %v1037_v56 = vld [vmem:[%s5634_s3 + $0x10] sm:$0xff]  ;;  %v4243_v4 = vld [vmem:[#allocation2 + $0x58] sm:$0xff] }
  0x3f   : > { %v4115_v11 = vand.u32 4294901760, %v444_v6  ;;  %v518_v30 = vsub.f32 %v4134_v20, %v5667_v24  ;;  %v2543_v50 = vld [vmem:[%s5635_s4] sm:$0xff]  ;;  %v4202_v51 = vsub.f32 %v4170_v35, %v5663_v37  ;;  %v4207_v52 = vsub.f32 %v4172_v36, %v5659_v38  ;;  %v4261_v14 = vld [vmem:[#allocation2 + $0x50] sm:$0xff]  ;;  %v2544_v23 = vld [vmem:[%s5635_s4 + $0x8] sm:$0xff]  ;;  %s421_s16 = scalar_lea.vmem [#allocation5], %s3295_s15  ;;  %s3204_s23 = scalar_lea.sflag [#allocation4], %s419_s17 }
  0x40   : > { %5917 = vst [vmem:[#allocation10_spill] sm:$0xff] %v4106_v5  ;;  %v446_v15 = vsel %vm443_vm0, %v4106_v5, 0  ;;  %v529_v31 = vsub.f32 %v4137_v21, %v5665_v25  ;;  %v4188_v45 = vsub.f32 %v4140_v22, %v5664_v28  ;;  %v5656_v58 = vand.u32 4294901760, %v4180_v41  ;;  %v4246_v7 = vld [vmem:[#allocation2 + $0x40] sm:$0xff]  ;;  %v4349_v38 = vld [vmem:[#allocation2 + $0xa8] sm:$0xff]  ;;  %v4362_v28 = vld [vmem:[#allocation2 + $0xb0] sm:$0xff] }
  0x41   : > { %v4128_v18 = vand.u32 4294901760, %v446_v15  ;;  %v4131_v19 = vsub.f32 %v444_v6, %v4115_v11  ;;  %v519_v42 = vand.u32 4294901760, %v518_v30  ;;  %5918 = vst [vmem:[#allocation11_spill] sm:$0xff] %v4202_v51  ;;  %5919 = vst [vmem:[#allocation12_spill] sm:$0xff] %v4207_v52  ;;  %v5653_v59 = vand.u32 4294901760, %v4190_v46  ;;  %v2567_v8 = vld [vmem:[%s5636_s5] sm:$0xff] }
  0x42   : > { %v530_v43 = vand.u32 4294901760, %v529_v31  ;;  %1026 = vperm.xlu0 %3837, %v1013_v29   ;;  %v3433_v60 = vpack.c.bf16 %v4207_v52, %v4202_v51  ;;  %v4224_v61 = vsub.f32 %v4176_v39, %v5658_v53  ;;  %v5652_v62 = vand.u32 4294901760, %v4192_v47  ;;  %1050 = vperm.xlu1 %3838, %v1037_v56   ;;  %v4274_v31 = vld [vmem:[#allocation2 + $0x78] sm:$0xff]  ;;  %v4360_v37 = vld [vmem:[#allocation2 + $0xa0] sm:$0xff]  ;;  %v2598_v25 = vld [vmem:[%s5637_s6 + $0x8] sm:$0xff]  ;;  %s3218_s19 = sshll.u32 %s421_s16, 4  ;;  %s5591_s19 = int_to_ptr.vmem [resolvable:$true] %s3218_s19 }
  0x43   : > { %449 = vmatprep.subr.mxu0 %v4128_v18  ;;  %v4149_v26 = vsub.f32 %v446_v15, %v4128_v18  ;;  %v5666_v27 = vand.u32 4294901760, %v4131_v19  ;;  %v5649_v63 = vand.u32 4294901760, %v4194_v48  ;;  %v4231_v1 = vsub.f32 %v4178_v40, %v5657_v57  ;;  %v4263_v15 = vld [vmem:[#allocation2 + $0x68] sm:$0xff]  ;;  %v2621_v24 = vld [vmem:[%s5638_s7] sm:$0xff]  ;;  %p6352_p9 = scmp.ne.s32.totalorder %s5910_s13, 0  ;;  %s3942_s25 = smov [#allocation5]  }
  0x44   : > { %451 = vmatpush1.msra.mxu0 %v4115_v11  ;;  %5920 = vst [vmem:[#allocation13_spill] sm:$0xff] %v4224_v61  ;;  %v4236_v2 = vsub.f32 %v4180_v41, %v5656_v58  ;;  %v4241_v3 = vsub.f32 %v4190_v46, %v5653_v59  ;;  %v5648_v6 = vand.u32 4294901760, %v4210_v54  ;;  %v4254_v9 = vsub.f32 %v4192_v47, %v5652_v62  ;;  %v4325_v62 = vld [vmem:[#allocation2 + $0x80] sm:$0xff]  ;;  %v4327_v59 = vld [vmem:[#allocation2 + $0x90] sm:$0xff]  ;;  %s3873_s30 = sshll.u32 %s3942_s25, 4  ;;  %s3874_s30 = int_to_ptr.vmem [resolvable:$false] %s3873_s30 }
  0x45   : > { %v5668_v32 = vand.u32 4294901760, %v4149_v26  ;;  %v557_v33 = vsub.f32 %v4131_v19, %v5666_v27  ;;  %520 = vmatmul.mubr.f32.vlgmr.msra.gmra.mrb[0].mxu0 %v519_v42  ;;  %5921 = vst [vmem:[#allocation14_spill] sm:$0xff] %v4231_v1  ;;  %v4259_v10 = vsub.f32 %v4194_v48, %v5649_v63  ;;  %v541_v17 = vand.u32 4294901760, %v4188_v45  ;;  %3434 = vmatprep.subr.bf16.mxu1 %v3433_v60  ;;  %v4309_v63 = vld [vmem:[#allocation2 + $0x98] sm:$0xff]  ;;  %s3875_s15 = scalar_lea.vmem %s3874_s30, 256  ;;  %p3876_p2 = scmp.lt.s32.totalorder %s5591_s19, %s3874_s30 }
  0x46   : > { %525 = vmatprep.mubr.f32.mxu0 %v5671_v0  ;;  %2548 = vperm.xlu0 %3837, %v2543_v50   ;;  %5922 = vst [vmem:[#allocation15_spill] sm:$0xff] %v4236_v2  ;;  %5923 = vst [vmem:[#allocation16_spill] sm:$0xff] %v4241_v3  ;;  %v3435_v29 = vpack.c.bf16 %v4231_v1, %v4224_v61  ;;  %v3437_v30 = vpack.c.bf16 %v4241_v3, %v4236_v2  ;;  %v5651_v34 = vand.u32 4294901760, %v4243_v4  ;;  %v3179_v3 = vld [vmem:[%s5640_s9] sm:$0xf]  ;;  %v4506_v1 = vld [vmem:[#allocation2 + $0x110] sm:$0xff] }
  0x47   : > { %v551_v44 = vsub.f32 %v4149_v26, %v5668_v32  ;;  %v558_v49 = vand.u32 4294901760, %v557_v33  ;;  %5924 = vst [vmem:[#allocation17_spill] sm:$0xff] %v4254_v9  ;;  %5925 = vst [vmem:[#allocation18_spill] sm:$0xff] %v4259_v10  ;;  %v4276_v33 = vld [vmem:[#allocation2 + $0x60] sm:$0xff]  ;;  %v4283_v42 = vsub.f32 %v4210_v54, %v5648_v6  ;;  %v3439_v45 = vpack.c.bf16 %v4259_v10, %v4254_v9  ;;  %v4307_v6 = vld [vmem:[#allocation2 + $0x88] sm:$0xff] }
  0x48   : > { %3436 = vmatpush1.bf16.msra.mxu1 %v3435_v29  ;;  %v5655_v50 = vand.u32 4294901760, %v4263_v15  ;;  %2553 = vperm.xlu1 %3838, %v2544_v23   ;;  %v4298_v56 = vsub.f32 %v4243_v4, %v5651_v34  ;;  %v5662_v29 = vand.u32 4294901760, %v4276_v33  ;;  %v2568_v23 = vld [vmem:[%s5636_s5 + $0x8] sm:$0xff]  ;;  %v5669_v57 = vand.u32 4294901760, %v4307_v6  ;;  %v2569_v32 = vld [vmem:[%s5636_s5 + $0x10] sm:$0xff]  ;;  %v4452_v9 = vld [vmem:[#allocation2 + $0xe0] sm:$0xff] }
  0x49   : > { %v552_v55 = vand.u32 4294901760, %v551_v44  ;;  %531 = vmatmul.mubr.f32.gmra.mrb[2].mxu0 %v530_v43  ;;  %5926 = vst [vmem:[#allocation19_spill] sm:$0xff] %v4283_v42  ;;  %v5650_v43 = vand.u32 4294901760, %v4246_v7  ;;  %v4286_v44 = vld [vmem:[#allocation2 + $0x70] sm:$0xff]  ;;  %3438 = vmatprep.subr.bf16.mxu1 %v3437_v30  ;;  %v5670_v53 = vand.u32 4294901760, %v4309_v63  ;;  %v5936_v5 = vand.u32 4294901760, %v4325_v62 }
  0x4a   : > { %536 = vmatprep.mubr.f32.mxu0 %v5671_v0  ;;  %2572 = vperm.xlu0 %3837, %v2567_v8   ;;  %5927 = vst [vmem:[#allocation20_spill] sm:$0xff] %v4298_v56  ;;  %v5660_v8 = vand.u32 4294901760, %v4274_v31  ;;  %v5661_v34 = vand.u32 4294901760, %v4286_v44  ;;  %5949 = vst [vmem:[#allocation35_spill] sm:$0xff] %v4452_v9  ;;  %v4520_v61 = vld [vmem:[#allocation2 + $0x138] sm:$0xff]  ;;  %v5968_v52 = vand.u32 4294901760, %v4149_v26 }
  0x4b   : > { %553 = vmatprep.subr.mxu0 %v552_v55  ;;  %v2597_v55 = vld [vmem:[%s5637_s6] sm:$0xff]  ;;  %v4303_v60 = vsub.f32 %v4246_v7, %v5650_v43  ;;  %v4322_v43 = vsub.f32 %v4263_v15, %v5655_v50  ;;  %v4340_v50 = vsub.f32 %v4276_v33, %v5662_v29  ;;  %v4378_v27 = vsub.f32 %v4309_v63, %v5670_v53  ;;  %v4384_v29 = vld [vmem:[#allocation2 + $0xc8] sm:$0xff] }
  0x4c   : > { %559 = vmatpush1.msra.mxu0 %v558_v49  ;;  %v5654_v49 = vand.u32 4294901760, %v4261_v14  ;;  %3440 = vmatpush1.bf16.msra.mxu1 %v3439_v45  ;;  %v4345_v58 = vsub.f32 %v4286_v44, %v5661_v34  ;;  %v2545_v45 = vld [vmem:[%s5635_s4 + $0x10] sm:$0xff]  ;;  %v4386_v34 = vld [vmem:[#allocation2 + $0xd8] sm:$0xff]  ;;  %5965 = vst [vmem:[#allocation45_spill] sm:$0xff] %v4506_v1  ;;  %5967 = vst [vmem:[#allocation47_spill] sm:$0xff] %v4520_v61 }
  0x4d   : > { %646 = vmatprep.subr.mxu0 %v4149_v26  ;;  %5928 = vst [vmem:[#allocation21_spill] sm:$0xff] %v4303_v60  ;;  %542 = vmatmul.mubr.f32.gmra.mrb[4].mxu0 %v541_v17  ;;  %5930 = vst [vmem:[#allocation23_spill] sm:$0xff] %v4322_v43  ;;  %v3441_v17 = vpack.c.bf16 %v4298_v56, %v4283_v42  ;;  %v2599_v56 = vld [vmem:[%s5637_s6 + $0x10] sm:$0xff]  ;;  %v5951_v42 = vand.u32 4294901760, %v4384_v29  ;;  %v5953_v10 = vand.u32 4294901760, %v4386_v34 }
  0x4e   : > { %v4317_v30 = vsub.f32 %v4261_v14, %v5654_v49  ;;  %622 = vmatprep.mubr.f32.mxu0 %v5671_v0  ;;  %v4335_v49 = vsub.f32 %v4274_v31, %v5660_v8  ;;  %2602 = vperm.xlu0 %3837, %v2597_v55   ;;  %5932 = vst [vmem:[#allocation25_spill] sm:$0xff] %v4340_v50  ;;  %5933 = vst [vmem:[#allocation26_spill] sm:$0xff] %v4345_v58  ;;  %v4351_v8 = vld [vmem:[#allocation2 + $0xb8] sm:$0xff]  ;;  %v3187_v26 = vld [vmem:[%s5641_s10] sm:$0xf] }
  0x4f   : > { %2577 = vperm.xlu1 %3838, %v2568_v23   ;;  %3442 = vmatprep.subr.bf16.mxu1 %v3441_v17  ;;  %v4373_v17 = vsub.f32 %v4307_v6, %v5669_v57  ;;  %5935 = vst [vmem:[#allocation28_spill] sm:$0xff] %v4378_v27  ;;  %v3447_v57 = vpack.c.bf16 %v4345_v58, %v4340_v50  ;;  %v4411_v50 = vld [vmem:[#allocation2 + $0xc0] sm:$0xff] }
  0x50   : > { %5929 = vst [vmem:[#allocation22_spill] sm:$0xff] %v4317_v30  ;;  %5931 = vst [vmem:[#allocation24_spill] sm:$0xff] %v4335_v49  ;;  %v3443_v55 = vpack.c.bf16 %v4317_v30, %v4303_v60  ;;  %v3445_v23 = vpack.c.bf16 %v4335_v49, %v4322_v43  ;;  %v4404_v58 = vsub.f32 %v4325_v62, %v5936_v5  ;;  %v4426_v49 = vld [vmem:[#allocation2 + $0xd0] sm:$0xff]  ;;  %v4428_v43 = vld [vmem:[#allocation2 + $0xe8] sm:$0xff] }
  0x51   : > { %624 = vmatmul.mubr.f32.vlgmr.msra.gmra.mrb[0].mxu0 %v4117_v12  ;;  %5934 = vst [vmem:[#allocation27_spill] sm:$0xff] %v4373_v17  ;;  %v4430_v30 = vld [vmem:[#allocation2 + $0xf8] sm:$0xff] }
  0x52   : > { %629 = vmatprep.mubr.f32.mxu0 %v5671_v0  ;;  %649 = vmatpush1.msra.mxu0 %v4131_v19  ;;  %5937 = vst [vmem:[#allocation29_spill] sm:$0xff] %v4404_v58  ;;  %v5938_v0 = vand.u32 4294901760, %v4327_v59 }
  0x53   : > { %738 = vmatprep.subr.mxu0 %v4128_v18  ;;  %2558 = vperm.xlu0 %3837, %v2545_v45   ;;  %v3449_v45 = vpack.c.bf16 %v4378_v27, %v4373_v17  ;;  %v5942_v27 = vand.u32 4294901760, %v4351_v8 }
  0x54   : > { %2607 = vperm.xlu1 %3838, %v2598_v25   ;;  %3444 = vmatpush1.bf16.msra.mxu1 %v3443_v55  ;;  %v4409_v53 = vsub.f32 %v4327_v59, %v5938_v0  ;;  %v5940_v25 = vand.u32 4294901760, %v4349_v38  ;;  %v4470_v0 = vsub.f32 %v4386_v34, %v5953_v10 }
  0x55   : > { %631 = vmatmul.mubr.f32.gmra.mrb[2].mxu0 %v4119_v13  ;;  %3446 = vmatprep.subr.bf16.mxu1 %v3445_v23  ;;  %v4422_v5 = vsub.f32 %v4351_v8, %v5942_v27  ;;  %v5944_v23 = vmov 0.0   ;;  %v5947_v27 = vand.u32 4294901760, %v4362_v28 }
  0x56   : > { %5939 = vst [vmem:[#allocation30_spill] sm:$0xff] %v4409_v53  ;;  %v4417_v55 = vsub.f32 %v4349_v38, %v5940_v25  ;;  %636 = vmatprep.mubr.f32.mxu0 %v5944_v23  ;;  %v5945_v25 = vand.u32 4294901760, %v4360_v37  ;;  %5954 = vst [vmem:[#allocation38_spill] sm:$0xff] %v4470_v0 }
  0x57   : > { %5943 = vst [vmem:[#allocation32_spill] sm:$0xff] %v4422_v5  ;;  %2626 = vperm.xlu0 %3837, %v2621_v24   ;;  %v4441_v17 = vsub.f32 %v4362_v28, %v5947_v27  ;;  %v3451_v24 = vpack.c.bf16 %v4409_v53, %v4404_v58  ;;  %v4454_v27 = vld [vmem:[#allocation2 + $0xf0] sm:$0xff]  ;;  %v4473_v53 = vld [vmem:[#allocation2 + $0x108] sm:$0xff]  ;;  %v4475_v58 = vld [vmem:[#allocation2 + $0x118] sm:$0xff] }
  0x58   : > { %5941 = vst [vmem:[#allocation31_spill] sm:$0xff] %v4417_v55  ;;  %v4436_v60 = vsub.f32 %v4360_v37, %v5945_v25  ;;  %2582 = vperm.xlu1 %3838, %v2569_v32   ;;  %3448 = vmatpush1.bf16.msra.mxu1 %v3447_v57  ;;  %5950 = vst [vmem:[#allocation36_spill] sm:$0xff] %v4454_v27  ;;  %v2622_v32 = vld [vmem:[%s5638_s7 + $0x8] sm:$0xff]  ;;  %v3453_v57 = vpack.c.bf16 %v4422_v5, %v4417_v55  ;;  %v5957_v5 = vand.u32 4294901760, %v4411_v50 }
  0x59   : > { %5948 = vst [vmem:[#allocation34_spill] sm:$0xff] %v4441_v17  ;;  %638 = vmatmul.mubr.f32.gmra.mrb[4].mxu0 %v4123_v16  ;;  %3450 = vmatprep.subr.bf16.mxu1 %v3449_v45  ;;  %v4465_v25 = vsub.f32 %v4384_v29, %v5951_v42  ;;  %5955 = vst [vmem:[#allocation39_spill] sm:$0xff] %v4473_v53  ;;  %v5963_v55 = vand.u32 4294901760, %v4430_v30  ;;  %v5975_v51 = vand.u32 4294901760, %v4475_v58 }
  0x5a   : > { %5946 = vst [vmem:[#allocation33_spill] sm:$0xff] %v4436_v60  ;;  %712 = vmatprep.mubr.f32.mxu0 %v5944_v23  ;;  %5956 = vst [vmem:[#allocation40_spill] sm:$0xff] %v4475_v58  ;;  %v3455_v45 = vpack.c.bf16 %v4441_v17, %v4436_v60  ;;  %v4482_v42 = vsub.f32 %v4411_v50, %v5957_v5  ;;  %v5961_v17 = vand.u32 4294901760, %v4428_v43  ;;  %v4504_v60 = vld [vmem:[#allocation2 + $0x100] sm:$0xff] }
  0x5b   : > { %5952 = vst [vmem:[#allocation37_spill] sm:$0xff] %v4465_v25  ;;  %2612 = vperm.xlu0 %3837, %v2599_v56   ;;  %v5959_v56 = vand.u32 4294901760, %v4426_v49  ;;  %v4502_v10 = vsub.f32 %v4430_v30, %v5963_v55  ;;  %v4518_v55 = vld [vmem:[#allocation2 + $0x128] sm:$0xff] }
  0x5c   : > { %5958 = vst [vmem:[#allocation41_spill] sm:$0xff] %v4482_v42  ;;  %2631 = vperm.xlu1 %3838, %v2622_v32   ;;  %3452 = vmatpush1.bf16.msra.mxu1 %v3451_v24  ;;  %v4497_v5 = vsub.f32 %v4428_v43, %v5961_v17  ;;  %v2623_v24 = vld [vmem:[%s5638_s7 + $0x10] sm:$0xff]  ;;  %v3457_v17 = vpack.c.bf16 %v4470_v0, %v4465_v25  ;;  %5966 = vst [vmem:[#allocation46_spill] sm:$0xff] %v4518_v55  ;;  %v5971_v32 = vand.u32 4294901760, %v4454_v27 }
  0x5d   : > { %v4492_v2 = vsub.f32 %v4426_v49, %v5959_v56  ;;  %5964 = vst [vmem:[#allocation44_spill] sm:$0xff] %v4502_v10  ;;  %715 = vmatmul.mubr.f32.vlgmr.msra.gmra.mrb[0].mxu0 %v4134_v20  ;;  %3454 = vmatprep.subr.bf16.mxu1 %v3453_v57  ;;  %v5969_v57 = vand.u32 4294901760, %v4452_v9  ;;  %v5980_v25 = vand.u32 4294901760, %v4506_v1 }
  0x5e   : > { %5962 = vst [vmem:[#allocation43_spill] sm:$0xff] %v4497_v5  ;;  %720 = vmatprep.mubr.f32.mxu0 %v5944_v23  ;;  %740 = vmatpush1.msra.mxu0 %v4115_v11  ;;  %v4532_v56 = vsub.f32 %v4454_v27, %v5971_v32  ;;  %v5973_v32 = vand.u32 4294901760, %v4473_v53 }
  0x5f   : > { %5960 = vst [vmem:[#allocation42_spill] sm:$0xff] %v4492_v2  ;;  %834 = vmatprep.subr.mxu0 %v5968_v52  ;;  %3182 = vperm.xlu0 %3837, %v3179_v3   ;;  %v4527_v0 = vsub.f32 %v4452_v9, %v5969_v57  ;;  %v3459_v52 = vpack.c.bf16 %v4492_v2, %v4482_v42  ;;  %v4543_v57 = vld [vmem:[#allocation2 + $0x120] sm:$0xff]  ;;  %v4562_v42 = vld [vmem:[#allocation2 + $0x158] sm:$0xff]  ;;  %v4583_v9 = vld [vmem:[#allocation2 + $0x150] sm:$0xff] }
  0x60   : > { %5972 = vst [vmem:[#allocation49_spill] sm:$0xff] %v4532_v56  ;;  %2636 = vperm.xlu1 %3838, %v2623_v24   ;;  %3456 = vmatpush1.bf16.msra.mxu1 %v3455_v45  ;;  %v3461_v3 = vpack.c.bf16 %v4502_v10, %v4497_v5  ;;  %v4549_v24 = vsub.f32 %v4473_v53, %v5973_v32  ;;  %v4558_v10 = vld [vmem:[#allocation2 + $0x130] sm:$0xff]  ;;  %v4560_v5 = vld [vmem:[#allocation2 + $0x148] sm:$0xff]  ;;  %5977 = vst [vmem:[#allocation52_spill] sm:$0xff] %v4562_v42  ;;  %v5978_v32 = vand.u32 4294901760, %v4504_v60 }
  0x61   : > { %5970 = vst [vmem:[#allocation48_spill] sm:$0xff] %v4527_v0  ;;  %723 = vmatmul.mubr.f32.gmra.mrb[2].mxu0 %v4137_v21  ;;  %3458 = vmatprep.subr.bf16.mxu1 %v3457_v17  ;;  %v4554_v45 = vsub.f32 %v4475_v58, %v5975_v51  ;;  %v3463_v17 = vpack.c.bf16 %v4532_v56, %v4527_v0  ;;  %v4581_v0 = vld [vmem:[#allocation2 + $0x140] sm:$0xff]  ;;  %v4599_v56 = vld [vmem:[#allocation2 + $0x168] sm:$0xff]  ;;  %v4601_v53 = vld [vmem:[#allocation2 + $0x178] sm:$0xff]  ;;  %v5992_v58 = vand.u32 4294901760, %v4562_v42 }
  0x62   : > { %5974 = vst [vmem:[#allocation50_spill] sm:$0xff] %v4549_v24  ;;  %728 = vmatprep.mubr.f32.mxu0 %v5944_v23  ;;  %v4570_v51 = vsub.f32 %v4504_v60, %v5978_v32  ;;  %v4575_v2 = vsub.f32 %v4506_v1, %v5980_v25  ;;  %v5984_v32 = vand.u32 4294901760, %v4520_v61 }
  0x63   : > { %5976 = vst [vmem:[#allocation51_spill] sm:$0xff] %v4554_v45  ;;  %v3465_v25 = vpack.c.bf16 %v4554_v45, %v4549_v24  ;;  %v4625_v45 = vsub.f32 %v4562_v42, %v5992_v58  ;;  %v5995_v58 = vand.u32 4294901760, %v4131_v19  ;;  %v4640_v42 = vld [vmem:[#allocation2 + $0x188] sm:$0xff] }
  0x64   : > { %5979 = vst [vmem:[#allocation53_spill] sm:$0xff] %v4570_v51  ;;  %5981 = vst [vmem:[#allocation54_spill] sm:$0xff] %v4575_v2  ;;  %3190 = vperm.xlu1 %3838, %v3187_v26   ;;  %3460 = vmatpush1.bf16.msra.mxu1 %v3459_v52  ;;  %v5982_v26 = vand.u32 4294901760, %v4518_v55  ;;  %v4596_v27 = vsub.f32 %v4520_v61, %v5984_v32  ;;  %v5988_v32 = vand.u32 4294901760, %v4558_v10 }
  0x65   : > { %731 = vmatmul.mubr.f32.gmra.mrb[4].mxu0 %v4140_v22  ;;  %3462 = vmatprep.subr.bf16.mxu1 %v3461_v3  ;;  %v3467_v3 = vpack.c.bf16 %v4575_v2, %v4570_v51  ;;  %5993 = vst [vmem:[#allocation60_spill] sm:$0xff] %v4625_v45  ;;  %v4633_v51 = vld [vmem:[#allocation2 + $0x160] sm:$0xff]  ;;  %v5998_v2 = vand.u32 4294901760, %v4583_v9 }
  0x66   : > { %v4591_v52 = vsub.f32 %v4518_v55, %v5982_v26  ;;  %5985 = vst [vmem:[#allocation56_spill] sm:$0xff] %v4596_v27  ;;  %803 = vmatprep.mubr.f32.mxu0 %v5944_v23  ;;  %v5986_v26 = vand.u32 4294901760, %v4543_v57  ;;  %v4615_v61 = vsub.f32 %v4558_v10, %v5988_v32  ;;  %v5990_v55 = vand.u32 4294901760, %v4560_v5 }
  0x67   : > { %v4653_v32 = vsub.f32 %v4583_v9, %v5998_v2 }
  0x68   : > { %5983 = vst [vmem:[#allocation55_spill] sm:$0xff] %v4591_v52  ;;  %3464 = vmatpush1.bf16.msra.mxu1 %v3463_v17  ;;  %v4610_v24 = vsub.f32 %v4543_v57, %v5986_v26  ;;  %5989 = vst [vmem:[#allocation58_spill] sm:$0xff] %v4615_v61  ;;  %v4620_v1 = vsub.f32 %v4560_v5, %v5990_v55  ;;  %v5994_v17 = vand.u32 4294901760, %v4134_v20  ;;  %v4635_v55 = vld [vmem:[#allocation2 + $0x170] sm:$0xff]  ;;  %v4642_v20 = vld [vmem:[#allocation2 + $0x198] sm:$0xff] }
  0x69   : > { %3466 = vmatprep.subr.bf16.mxu1 %v3465_v25  ;;  %v3469_v26 = vpack.c.bf16 %v4596_v27, %v4591_v52  ;;  %v5996_v25 = vand.u32 4294901760, %v4581_v0  ;;  %5999 = vst [vmem:[#allocation62_spill] sm:$0xff] %v4653_v32  ;;  %v6000_v52 = vand.u32 4294901760, %v4137_v21 }
  0x6a   : > { %5987 = vst [vmem:[#allocation57_spill] sm:$0xff] %v4610_v24  ;;  %5991 = vst [vmem:[#allocation59_spill] sm:$0xff] %v4620_v1  ;;  %807 = vmatmul.mubr.f32.vlgmr.msra.gmra.mrb[0].mxu0 %v5994_v17  ;;  %v3471_v19 = vpack.c.bf16 %v4615_v61, %v4610_v24  ;;  %v6006_v24 = vand.u32 4294901760, %v4140_v22  ;;  %v6010_v22 = vand.u32 4294901760, %v4172_v36 }
  0x6b   : > { %812 = vmatprep.mubr.f32.mxu0 %v5944_v23  ;;  %838 = vmatpush1.msra.mxu0 %v5995_v58  ;;  %v4648_v17 = vsub.f32 %v4581_v0, %v5996_v25  ;;  %v3473_v58 = vpack.c.bf16 %v4625_v45, %v4620_v1  ;;  %v6001_v25 = vand.u32 4294901760, %v4599_v56  ;;  %v4675_v1 = vld [vmem:[#allocation2 + $0x180] sm:$0xff]  ;;  %v6009_v45 = vand.u32 4294901760, %v4170_v35 }
  0x6c   : > { %924 = vmatprep.subr.mxu0 %v4128_v18  ;;  %3468 = vmatpush1.bf16.msra.mxu1 %v3467_v3  ;;  %v6002_v3 = vand.u32 4294901760, %v4601_v53  ;;  %v4677_v18 = vld [vmem:[#allocation2 + $0x190] sm:$0xff]  ;;  %v1233_v27 = vand.u32 4294901760, %v4675_v1 }
  0x6d   : > { %5997 = vst [vmem:[#allocation61_spill] sm:$0xff] %v4648_v17  ;;  %3470 = vmatprep.subr.bf16.mxu1 %v3469_v26  ;;  %v4666_v2 = vsub.f32 %v4599_v56, %v6001_v25  ;;  %v3475_v21 = vpack.c.bf16 %v4653_v32, %v4648_v17  ;;  %v6005_v25 = vand.u32 4294901760, %v4635_v55  ;;  %v6007_v32 = vand.u32 4294901760, %v4640_v42 }
  0x6e   : > { %816 = vmatmul.mubr.f32.gmra.mrb[2].mxu0 %v6000_v52  ;;  %v4671_v61 = vsub.f32 %v4601_v53, %v6002_v3  ;;  %v6004_v52 = vand.u32 4294901760, %v4633_v51  ;;  %v6008_v17 = vand.u32 4294901760, %v4642_v20 }
  0x6f   : > { %821 = vmatprep.mubr.f32.mxu0 %v5944_v23  ;;  %v4690_v3 = vsub.f32 %v4635_v55, %v6005_v25 }
  0x70   : > { %6003 = vst [vmem:[#allocation63_spill] sm:$0xff] %v4671_v61  ;;  %3472 = vmatpush1.bf16.msra.mxu1 %v3471_v19  ;;  %v4685_v26 = vsub.f32 %v4633_v51, %v6004_v52  ;;  %v3477_v19 = vpack.c.bf16 %v4671_v61, %v4666_v2  ;;  %v4701_v52 = vsub.f32 %v4640_v42, %v6007_v32 }
  0x71   : > { %3474 = vmatprep.subr.bf16.mxu1 %v3473_v58  ;;  %v4706_v25 = vsub.f32 %v4642_v20, %v6008_v17  ;;  %v4720_v32 = vsub.f32 %v4675_v1, %v1233_v27  ;;  %v6012_v17 = vand.u32 4294901760, %v4677_v18 }
  0x72   : > { %825 = vmatmul.mubr.f32.gmra.mrb[4].mxu0 %v6006_v24  ;;  %v4713_v24 = vpack.c.bf16 %v6010_v22, %v6009_v45  ;;  %v3479_v58 = vpack.c.bf16 %v4690_v3, %v4685_v26  ;;  %v6013_v45 = vand.u32 4294901760, %v4176_v39  ;;  %v6017_v22 = vand.u32 4294901760, %v4190_v46 }
  0x73   : > { %901 = vmatprep.mubr.f32.mxu0 %v5944_v23  ;;  %v4725_v61 = vsub.f32 %v4677_v18, %v6012_v17  ;;  %v3481_v35 = vpack.c.bf16 %v4706_v25, %v4701_v52  ;;  %v6019_v17 = vand.u32 4294901760, %v4192_v47  ;;  %v6020_v39 = vand.u32 4294901760, %v4194_v48 }
  0x74   : > { %6011 = vst [vmem:[#allocation64_spill] sm:$0xff] %v4713_v24  ;;  %3476 = vmatpush1.bf16.msra.mxu1 %v3475_v21  ;;  %v6026_v47 = vand.u32 4294901760, %v4261_v14  ;;  %v6034_v14 = vand.u32 4294901760, %v4307_v6  ;;  %v6044_v6 = vand.u32 4294901760, %v4362_v28  ;;  %v6052_v28 = vand.u32 4294901760, %v4428_v43 }
  0x75   : > { %3478 = vmatprep.subr.bf16.mxu1 %v3477_v19  ;;  %v3483_v36 = vpack.c.bf16 %v4725_v61, %v4720_v32  ;;  %v6016_v19 = vand.u32 4294901760, %v4180_v41  ;;  %v6023_v41 = vand.u32 4294901760, %v4243_v4  ;;  %v6029_v4 = vand.u32 4294901760, %v4274_v31 }
  0x76   : > { %903 = vmatmul.mubr.f32.vlgmr.msra.gmra.mrb[0].mxu0 %v4117_v12  ;;  %v6038_v31 = vand.u32 4294901760, %v4327_v59  ;;  %v6046_v59 = vand.u32 4294901760, %v4384_v29  ;;  %v6064_v43 = vand.u32 4294901760, %v4504_v60  ;;  %v6076_v60 = vand.u32 4294901760, %v4560_v5 }
  0x77   : > { %908 = vmatprep.mubr.f32.mxu0 %v5944_v23  ;;  %926 = vmatpush1.msra.mxu0 %v4115_v11  ;;  %v6014_v11 = vand.u32 4294901760, %v4178_v40  ;;  %v6022_v40 = vand.u32 4294901760, %v4210_v54  ;;  %v6028_v54 = vand.u32 4294901760, %v4263_v15  ;;  %v6035_v15 = vand.u32 4294901760, %v4309_v63 }
  0x78   : > { %3306 = vmatprep.subr.bf16.mxu0 %v4713_v24  ;;  %3480 = vmatpush1.bf16.msra.mxu1 %v3479_v58  ;;  %v4749_v58 = vpack.c.bf16 %v6017_v22, %v6016_v19  ;;  %v6043_v63 = vand.u32 4294901760, %v4360_v37  ;;  %v6053_v37 = vand.u32 4294901760, %v4430_v30  ;;  %v6065_v30 = vld [vmem:[#allocation45_spill] sm:$0xff] }
  0x79   : > { %3482 = vmatprep.subr.bf16.mxu1 %v3481_v35  ;;  %v4743_v21 = vpack.c.bf16 %v6014_v11, %v6013_v45  ;;  %v4758_v35 = vpack.c.bf16 %v6020_v39, %v6019_v17  ;;  %v4765_v46 = vpack.c.bf16 %v6023_v41, %v6022_v40  ;;  %v4796_v11 = vpack.c.bf16 %v6035_v15, %v6034_v14 }
  0x7a   : > { %910 = vmatmul.mubr.f32.gmra.mrb[2].mxu0 %v4119_v13  ;;  %6018 = vst [vmem:[#allocation66_spill] sm:$0xff] %v4749_v58  ;;  %v4817_v17 = vpack.c.bf16 %v6044_v6, %v6043_v63  ;;  %v4838_v41 = vpack.c.bf16 %v6053_v37, %v6052_v28  ;;  %v6066_v14 = vand.u32 4294901760, %v6065_v30  ;;  %v6073_v6 = vand.u32 4294901760, %v4543_v57  ;;  %v1126_v57 = vld [vmem:[#allocation2 + $0x1b8] sm:$0xff] }
  0x7b   : > { %915 = vmatprep.mubr.f32.mxu0 %v5944_v23  ;;  %6015 = vst [vmem:[#allocation65_spill] sm:$0xff] %v4743_v21  ;;  %6021 = vst [vmem:[#allocation67_spill] sm:$0xff] %v4758_v35  ;;  %v6080_v37 = vand.u32 4294901760, %v4581_v0  ;;  %v1243_v5 = vand.u32 4294901760, %v1126_v57  ;;  %v6084_v0 = vand.u32 4294901760, %v4601_v53 }
  0x7c   : > { %3484 = vmatpush1.bf16.msra.mxu1 %v3483_v36  ;;  %6024 = vst [vmem:[#allocation68_spill] sm:$0xff] %v4765_v46  ;;  %v4781_v36 = vpack.c.bf16 %v6029_v4, %v6028_v54  ;;  %6036 = vst [vmem:[#allocation72_spill] sm:$0xff] %v4796_v11  ;;  %v6061_v4 = vld [vmem:[#allocation40_spill] sm:$0xff]  ;;  %v4859_v15 = vpack.c.bf16 %v6066_v14, %v6064_v43  ;;  %v6086_v14 = vand.u32 4294901760, %v4633_v51 }
  0x7d   : > { %6045 = vst [vmem:[#allocation75_spill] sm:$0xff] %v4817_v17  ;;  %6054 = vst [vmem:[#allocation78_spill] sm:$0xff] %v4838_v41  ;;  %v4899_v30 = vsub.f32 %v1126_v57, %v1243_v5 }
  0x7e   : > { %917 = vmatmul.mubr.f32.gmra.mrb[4].mxu0 %v4123_v16  ;;  %6030 = vst [vmem:[#allocation70_spill] sm:$0xff] %v4781_v36 }
  0x7f   : > { %989 = vmatprep.mubr.f32.mxu0 %v5944_v23 }
  0x82   : > { %991 = vmatmul.mubr.f32.vlgmr.msra.gmra.mrb[0].mxu0 %v4117_v12  ;;  %v6025_v12 = vand.u32 4294901760, %v4246_v7  ;;  %v6032_v7 = vand.u32 4294901760, %v4286_v44  ;;  %v6041_v44 = vand.u32 4294901760, %v4351_v8  ;;  %v6050_v8 = vand.u32 4294901760, %v4426_v49  ;;  %v6059_v49 = vld [vmem:[#allocation39_spill] sm:$0xff] }
  0x83   : > { %996 = vmatprep.mubr.f32.mxu0 %v5944_v23  ;;  %3308 = vmatpush1.bf16.msra.mxu0 %v4743_v21 }
  0x84   : > { %3310 = vmatprep.subr.bf16.mxu0 %v4749_v58  ;;  %v4774_v48 = vpack.c.bf16 %v6026_v47, %v6025_v12  ;;  %v6057_v12 = vld [vmem:[#allocation36_spill] sm:$0xff] }
  0x85   : > { %v6058_v47 = vand.u32 4294901760, %v6057_v12  ;;  %6067 = vst [vmem:[#allocation36_spill] sm:$0xff] %v4859_v15 }
  0x86   : > { %998 = vmatmul.mubr.f32.gmra.mrb[2].mxu0 %v4119_v13  ;;  %6027 = vst [vmem:[#allocation69_spill] sm:$0xff] %v4774_v48  ;;  %v6031_v13 = vand.u32 4294901760, %v4276_v33  ;;  %v6040_v33 = vand.u32 4294901760, %v4349_v38  ;;  %v6049_v38 = vand.u32 4294901760, %v4411_v50  ;;  %v6060_v50 = vand.u32 4294901760, %v6059_v49  ;;  %v1125_v49 = vld [vmem:[#allocation2 + $0x1b0] sm:$0xff] }
  0x87   : > { %1003 = vmatprep.mubr.f32.mxu0 %v5944_v23  ;;  %3312 = vmatpush1.bf16.msra.mxu0 %v4758_v35 }
  0x88   : > { %3314 = vmatprep.subr.bf16.mxu0 %v4765_v46  ;;  %v4789_v45 = vpack.c.bf16 %v6032_v7, %v6031_v13  ;;  %v4810_v22 = vpack.c.bf16 %v6041_v44, %v6040_v33  ;;  %v4831_v40 = vpack.c.bf16 %v6050_v8, %v6049_v38  ;;  %v6062_v13 = vand.u32 4294901760, %v6061_v4  ;;  %v6070_v33 = vld [vmem:[#allocation47_spill] sm:$0xff]  ;;  %v6077_v38 = vld [vmem:[#allocation52_spill] sm:$0xff] }
  0x89   : > { %v6071_v44 = vand.u32 4294901760, %v6070_v33  ;;  %v6078_v8 = vand.u32 4294901760, %v6077_v38  ;;  %v1245_v4 = vand.u32 4294901760, %v1125_v49  ;;  %v1127_v38 = vld [vmem:[#allocation2 + $0x1c0] sm:$0xff] }
  0x8a   : > { %1005 = vmatmul.mubr.f32.gmra.mrb[4].mxu0 %v4123_v16  ;;  %6033 = vst [vmem:[#allocation71_spill] sm:$0xff] %v4789_v45  ;;  %v6037_v16 = vand.u32 4294901760, %v4325_v62  ;;  %6042 = vst [vmem:[#allocation74_spill] sm:$0xff] %v4810_v22  ;;  %v6047_v62 = vand.u32 4294901760, %v4386_v34  ;;  %v6055_v34 = vld [vmem:[#allocation35_spill] sm:$0xff]  ;;  %v4852_v7 = vpack.c.bf16 %v6062_v13, %v6060_v50  ;;  %v6083_v13 = vand.u32 4294901760, %v4599_v56 }
  0x8b   : > { %3316 = vmatpush1.bf16.msra.mxu0 %v4774_v48  ;;  %6051 = vst [vmem:[#allocation77_spill] sm:$0xff] %v4831_v40  ;;  %v6056_v29 = vand.u32 4294901760, %v6055_v34  ;;  %v4880_v28 = vpack.c.bf16 %v6078_v8, %v6076_v60  ;;  %v6081_v34 = vand.u32 4294901760, %v4583_v9  ;;  %v1130_v56 = vld [vmem:[#allocation2 + $0x1d8] sm:$0xff]  ;;  %v1129_v8 = vld [vmem:[#allocation2 + $0x1d0] sm:$0xff] }
  0x8c   : > { %3318 = vmatprep.subr.bf16.mxu0 %v4781_v36  ;;  %v4803_v19 = vpack.c.bf16 %v6038_v31, %v6037_v16  ;;  %v4824_v39 = vpack.c.bf16 %v6047_v62, %v6046_v59  ;;  %6063 = vst [vmem:[#allocation35_spill] sm:$0xff] %v4852_v7  ;;  %v6068_v16 = vld [vmem:[#allocation46_spill] sm:$0xff]  ;;  %v6074_v59 = vand.u32 4294901760, %v4558_v10  ;;  %v1124_v10 = vld [vmem:[#allocation2 + $0x1a8] sm:$0xff]  ;;  %v4895_v43 = vpack.c.bf16 %v6084_v0, %v6083_v13 }
  0x8d   : > { %v4845_v54 = vpack.c.bf16 %v6058_v47, %v6056_v29  ;;  %v6069_v31 = vand.u32 4294901760, %v6068_v16  ;;  %6079 = vst [vmem:[#allocation45_spill] sm:$0xff] %v4880_v28  ;;  %v4887_v29 = vpack.c.bf16 %v6081_v34, %v6080_v37  ;;  %v1239_v12 = vand.u32 4294901760, %v1124_v10  ;;  %v1123_v47 = vld [vmem:[#allocation2 + $0x1a0] sm:$0xff] }
  0x8e   : > { %6039 = vst [vmem:[#allocation73_spill] sm:$0xff] %v4803_v19  ;;  %6048 = vst [vmem:[#allocation76_spill] sm:$0xff] %v4824_v39  ;;  %v4873_v62 = vpack.c.bf16 %v6074_v59, %v6073_v6  ;;  %v1241_v50 = vand.u32 4294901760, %v1123_v47  ;;  %v6087_v16 = vand.u32 4294901760, %v4635_v55  ;;  %v1128_v6 = vld [vmem:[#allocation2 + $0x1c8] sm:$0xff]  ;;  %v1251_v60 = vand.u32 4294901760, %v1130_v56 }
  0x8f   : > { %3320 = vmatpush1.bf16.msra.mxu0 %v4789_v45  ;;  %v4866_v63 = vpack.c.bf16 %v6071_v44, %v6069_v31  ;;  %6082 = vst [vmem:[#allocation46_spill] sm:$0xff] %v4887_v29  ;;  %6085 = vst [vmem:[#allocation47_spill] sm:$0xff] %v4895_v43  ;;  %v4897_v9 = vsub.f32 %v1124_v10, %v1239_v12  ;;  %v4909_v44 = vsub.f32 %v1125_v49, %v1245_v4 }
  0x90   : > { %3322 = vmatprep.subr.bf16.mxu0 %v4796_v11  ;;  %6075 = vst [vmem:[#allocation40_spill] sm:$0xff] %v4873_v62  ;;  %v4905_v31 = vpack.c.bf16 %v6087_v16, %v6086_v14  ;;  %v4907_v33 = vsub.f32 %v1123_v47, %v1241_v50  ;;  %v1247_v59 = vand.u32 4294901760, %v1128_v6  ;;  %v1249_v55 = vand.u32 4294901760, %v1127_v38 }
  0x91   : > { %6072 = vst [vmem:[#allocation39_spill] sm:$0xff] %v4866_v63  ;;  %v3485_v53 = vpack.c.bf16 %v4899_v30, %v4897_v9  ;;  %v1253_v37 = vand.u32 4294901760, %v1129_v8  ;;  %v6089_v34 = vand.u32 4294901760, %v4640_v42  ;;  %v6090_v10 = vand.u32 4294901760, %v4642_v20  ;;  %v1132_v42 = vld [vmem:[#allocation2 + $0x1e8] sm:$0xff] }
  0x92   : > { %6088 = vst [vmem:[#allocation52_spill] sm:$0xff] %v4905_v31  ;;  %v3487_v51 = vpack.c.bf16 %v4909_v44, %v4907_v33  ;;  %v4923_v47 = vsub.f32 %v1128_v6, %v1247_v59  ;;  %v4925_v49 = vsub.f32 %v1130_v56, %v1251_v60  ;;  %v6093_v13 = vand.u32 4294901760, %v4677_v18 }
  0x93   : > { %3324 = vmatpush1.bf16.msra.mxu0 %v4803_v19  ;;  %3486 = vmatprep.subr.bf16.mxu1 %v3485_v53  ;;  %v4921_v57 = vpack.c.bf16 %v6090_v10, %v6089_v34  ;;  %v4933_v14 = vsub.f32 %v1127_v38, %v1249_v55  ;;  %v4935_v16 = vsub.f32 %v1129_v8, %v1253_v37  ;;  %v1134_v53 = vld [vmem:[#allocation2 + $0x1f8] sm:$0xff]  ;;  %v1255_v6 = vand.u32 4294901760, %v1132_v42  ;;  %v1133_v34 = vld [vmem:[#allocation2 + $0x1f0] sm:$0xff] }
  0x94   : > { %3326 = vmatprep.subr.bf16.mxu0 %v4810_v22  ;;  %6092 = vst [vmem:[#allocation80_spill] sm:$0xff] %v4925_v49  ;;  %3488 = vmatpush1.bf16.msra.mxu1 %v3487_v51  ;;  %v4931_v0 = vpack.c.bf16 %v6093_v13, %v1233_v27  ;;  %v3489_v20 = vpack.c.bf16 %v4925_v49, %v4923_v47  ;;  %v1259_v56 = vand.u32 4294901760, %v1134_v53  ;;  %v1131_v51 = vld [vmem:[#allocation2 + $0x1e0] sm:$0xff]  ;;  %v1261_v18 = vand.u32 4294901760, %v1133_v34 }
  0x95   : > { %6091 = vst [vmem:[#allocation79_spill] sm:$0xff] %v4921_v57  ;;  %6095 = vst [vmem:[#allocation82_spill] sm:$0xff] %v4933_v14  ;;  %v3491_v1 = vpack.c.bf16 %v4935_v16, %v4933_v14  ;;  %v1257_v27 = vand.u32 4294901760, %v1131_v51  ;;  %v4943_v38 = vpack.c.bf16 %v1243_v5, %v1239_v12  ;;  %v4945_v8 = vsub.f32 %v1132_v42, %v1255_v6 }
  0x96   : > { %6094 = vst [vmem:[#allocation81_spill] sm:$0xff] %v4931_v0  ;;  %6096 = vst [vmem:[#allocation83_spill] sm:$0xff] %v4935_v16  ;;  %3490 = vmatprep.subr.bf16.mxu1 %v3489_v20  ;;  %v4947_v10 = vsub.f32 %v1134_v53, %v1259_v56  ;;  %v4949_v13 = vpack.c.bf16 %v1245_v4, %v1241_v50  ;;  %v4961_v5 = vpack.c.bf16 %v1251_v60, %v1247_v59  ;;  %v6105_v4 = vld [vmem:[#allocation11_spill] sm:$0xff]  ;;  %v6106_v53 = vld [vmem:[#allocation12_spill] sm:$0xff] }
  0x97   : > { %3328 = vmatpush1.bf16.msra.mxu0 %v4817_v17  ;;  %6097 = vst [vmem:[#allocation84_spill] sm:$0xff] %v4943_v38  ;;  %6098 = vst [vmem:[#allocation85_spill] sm:$0xff] %v4945_v8  ;;  %v4951_v23 = vsub.f32 %v1131_v51, %v1257_v27  ;;  %v4963_v50 = vpack.c.bf16 %v1253_v37, %v1249_v55  ;;  %v1314_v42 = vand.u32 4294901760, %v6105_v4  ;;  %v1326_v20 = vand.u32 4294901760, %v6106_v53 }
  0x98   : > { %3330 = vmatprep.subr.bf16.mxu0 %v4824_v39  ;;  %6099 = vst [vmem:[#allocation86_spill] sm:$0xff] %v4947_v10  ;;  %3492 = vmatpush1.bf16.msra.mxu1 %v3491_v1  ;;  %6100 = vst [vmem:[#allocation87_spill] sm:$0xff] %v4949_v13  ;;  %v4970_v51 = vpack.c.bf16 %v1259_v56, %v1255_v6  ;;  %v4974_v60 = vpack.c.bf16 %v1261_v18, %v1257_v27  ;;  %v6111_v6 = vld [vmem:[#allocation14_spill] sm:$0xff]  ;;  %v6114_v27 = vld [vmem:[#allocation17_spill] sm:$0xff] }
  0x99   : > { %6101 = vst [vmem:[#allocation88_spill] sm:$0xff] %v4951_v23  ;;  %6103 = vst [vmem:[#allocation90_spill] sm:$0xff] %v4961_v5  ;;  %v1327_v59 = vsub.f32 %v6106_v53, %v1326_v20  ;;  %v4978_v1 = vpack.c.bf16 %v1326_v20, %v1314_v42  ;;  %v5788_v56 = vand.u32 4294901760, %v6111_v6 }
  0x9a   : > { %6104 = vst [vmem:[#allocation91_spill] sm:$0xff] %v4963_v50  ;;  %6107 = vst [vmem:[#allocation11_spill] sm:$0xff] %v4970_v51 }
  0x9b   : > { %3332 = vmatpush1.bf16.msra.mxu0 %v4831_v40  ;;  %6108 = vst [vmem:[#allocation12_spill] sm:$0xff] %v4974_v60  ;;  %v1328_v37 = vand.u32 4294901760, %v1327_v59  ;;  %6109 = vst [vmem:[#allocation92_spill] sm:$0xff] %v4978_v1  ;;  %v6116_v1 = vld [vmem:[#allocation19_spill] sm:$0xff] }
  0x9c   : > { %3334 = vmatprep.subr.bf16.mxu0 %v4838_v41 }
  0x9f   : > { %3336 = vmatpush1.bf16.msra.mxu0 %v4845_v54 }
  0xa0   : > { %3338 = vmatprep.subr.bf16.mxu0 %v4852_v7 }
  0xa3   : > { %3340 = vmatpush1.bf16.msra.mxu0 %v4859_v15 }
  0xa4   : > { %3342 = vmatprep.subr.bf16.mxu0 %v4866_v63 }
  0xa7   : > { %3344 = vmatpush1.bf16.msra.mxu0 %v4873_v62 }
  0xa8   : > { %3346 = vmatprep.subr.bf16.mxu0 %v4880_v28 }
  0xab   : > { %3348 = vmatpush1.bf16.msra.mxu0 %v4887_v29 }
  0xac   : > { %3350 = vmatprep.subr.bf16.mxu0 %v4895_v43 }
  0xaf   : > { %3352 = vmatpush1.bf16.msra.mxu0 %v4905_v31 }
  0xb0   : > { %3354 = vmatprep.subr.bf16.mxu0 %v4921_v57  ;;  %v4953_v57 = vsub.f32 %v1133_v34, %v1261_v18  ;;  %v1315_v34 = vsub.f32 %v6105_v4, %v1314_v42  ;;  %v5808_v18 = vand.u32 4294901760, %v6114_v27  ;;  %v1333_v42 = vsub.f32 %v6111_v6, %v5788_v56 }
  0xb2   : > { %6102 = vst [vmem:[#allocation89_spill] sm:$0xff] %v4953_v57  ;;  %v3495_v12 = vpack.c.bf16 %v4953_v57, %v4951_v23  ;;  %v1316_v55 = vand.u32 4294901760, %v1315_v34  ;;  %v1334_v23 = vand.u32 4294901760, %v1333_v42 }
  0xb3   : > { %3356 = vmatpush1.bf16.msra.mxu0 %v4931_v0  ;;  %v3493_v0 = vpack.c.bf16 %v4947_v10, %v4945_v8 }
  0xb4   : > { %3358 = vmatprep.subr.bf16.mxu0 %v4943_v38 }
  0xb5   : > { %3494 = vmatprep.subr.bf16.mxu1 %v3493_v0  ;;  %v3369_v0 = vpack.c.bf16 %v1328_v37, %v1316_v55 }
  0xb6   : > { %3496 = vmatpush1.bf16.msra.mxu1 %v3495_v12  ;;  %v6110_v12 = vld [vmem:[#allocation13_spill] sm:$0xff] }
  0xb7   : > { %3360 = vmatpush1.bf16.msra.mxu0 %v4949_v13  ;;  %3498 = vmatprep.subr.bf16.mxu1 %v4713_v24  ;;  %v5786_v24 = vand.u32 4294901760, %v6110_v12  ;;  %v6115_v13 = vld [vmem:[#allocation18_spill] sm:$0xff] }
  0xb8   : > { %3362 = vmatprep.subr.bf16.mxu0 %v4961_v5  ;;  %v6113_v5 = vld [vmem:[#allocation16_spill] sm:$0xff] }
  0xb9   : > { %v5800_v53 = vand.u32 4294901760, %v6113_v5  ;;  %v1017_v34 = vpop.permute.xlu0 %1016  ;;  %v1321_v59 = vsub.f32 %v6110_v12, %v5786_v24  ;;  %v1022_v37 = vpop.permute.xlu1 %1021  ;;  %v5818_v12 = vand.u32 4294901760, %v6116_v1 }
  0xbb   : > { %3364 = vmatpush1.bf16.msra.mxu0 %v4963_v50  ;;  %v6112_v50 = vld [vmem:[#allocation15_spill] sm:$0xff]  ;;  %v1351_v55 = vsub.f32 %v6113_v5, %v5800_v53  ;;  %v1322_v6 = vand.u32 4294901760, %v1321_v59 }
  0xbc   : > { %3366 = vmatprep.subr.bf16.mxu0 %v4970_v51  ;;  %v5794_v4 = vand.u32 4294901760, %v6112_v50  ;;  %v5812_v51 = vand.u32 4294901760, %v6115_v13 }
  0xbd   : > { %v1352_v53 = vand.u32 4294901760, %v1351_v55  ;;  %v1041_v5 = vpop.permute.xlu0 %1040  ;;  %v1046_v57 = vpop.permute.xlu1 %1045 }
  0xbe   : > { %v1339_v20 = vsub.f32 %v6112_v50, %v5794_v4  ;;  %v1357_v24 = vsub.f32 %v6115_v13, %v5812_v51  ;;  %v1363_v51 = vsub.f32 %v6116_v1, %v5818_v12  ;;  %v6119_v13 = vld [vmem:[#allocation22_spill] sm:$0xff] }
  0xbf   : > { %3368 = vmatpush1.bf16.msra.mxu0 %v4974_v60  ;;  %v6117_v60 = vld [vmem:[#allocation20_spill] sm:$0xff] }
  0xc0   : > { %3370 = vmatprep.subr.bf16.mxu0 %v3369_v0  ;;  %v1345_v0 = vsub.f32 %v6114_v27, %v5808_v18  ;;  %v1340_v38 = vand.u32 4294901760, %v1339_v20  ;;  %v1358_v16 = vand.u32 4294901760, %v1357_v24  ;;  %v6118_v18 = vld [vmem:[#allocation21_spill] sm:$0xff]  ;;  %v6120_v42 = vand.u32 4294901760, %v6117_v60 }
  0xc1   : > { %v5014_v24 = vpack.c.bf16 %v1334_v23, %v1322_v6  ;;  %v6121_v12 = vand.u32 4294901760, %v6118_v18  ;;  %v1364_v1 = vand.u32 4294901760, %v1363_v51  ;;  %v1027_v23 = vpop.permute.xlu0 %1026 }
  0xc2   : > { %v1346_v8 = vand.u32 4294901760, %v1345_v0  ;;  %v1375_v20 = vsub.f32 %v6117_v60, %v6120_v42  ;;  %v5016_v0 = vpack.c.bf16 %v1352_v53, %v1340_v38  ;;  %v6130_v60 = vld [vmem:[#allocation25_spill] sm:$0xff] }
  0xc4   : > { %v5018_v49 = vpack.c.bf16 %v1358_v16, %v1346_v8  ;;  %v1376_v53 = vand.u32 4294901760, %v1375_v20  ;;  %v6125_v16 = vld [vmem:[#allocation23_spill] sm:$0xff] }
 0x155   : > { %v992_v56 = vpop.f32.mrb[0].mxu0 }
 0x156   : > { %v1029_v4 = vmul.f32 %v1017_v34, %v992_v56  ;;  %v994_v50 = vpop.f32.mrb[1].mxu0 }
 0x157   : > { %v1030_v10 = vmul.f32 %v1017_v34, %v994_v50 }
 0x158   : > { %v1053_v14 = vadd.f32 %v1041_v5, %v1029_v4 }
 0x159   : > { %v1054_v31 = vadd.f32 %v1041_v5, %v1030_v10  ;;  %v999_v56 = vpop.f32.mrb[2].mxu0  ;;  %v1369_v10 = vsub.f32 %v6118_v18, %v6121_v12 }
 0x15a   : > { %v1059_v55 = vmax.f32 %v1053_v14, 0.0  ;;  %v1031_v50 = vmul.f32 %v1022_v37, %v999_v56  ;;  %v1001_v34 = vpop.f32.mrb[3].mxu0  ;;  %v6123_v14 = vand.u32 4294901760, %v6119_v13 }
 0x15b   : > { %v1060_v4 = vmax.f32 %v1054_v31, 0.0  ;;  %v1032_v27 = vmul.f32 %v1022_v37, %v1001_v34  ;;  %v1370_v18 = vand.u32 4294901760, %v1369_v10 }
 0x15c   : > { %v5023_v5 = vmin.f32 %v1059_v55, 6.0  ;;  %v1055_v59 = vadd.f32 %v1046_v57, %v1031_v50  ;;  %v1381_v56 = vsub.f32 %v6119_v13, %v6123_v14  ;;  %v6127_v50 = vld [vmem:[#allocation24_spill] sm:$0xff]  ;;  %v1051_v13 = vpop.permute.xlu1 %1050 }
 0x15d   : > { %v5028_v6 = vmin.f32 %v1060_v4, 6.0  ;;  %v1056_v38 = vadd.f32 %v1046_v57, %v1032_v27  ;;  %v1006_v31 = vpop.f32.mrb[4].mxu0 }
 0x15e   : > { %6122 = vst [vmem:[#allocation93_spill] sm:$0xff] %v5023_v5  ;;  %v5032_v37 = vand.u32 4294901760, %v5023_v5  ;;  %v1061_v12 = vmax.f32 %v1055_v59, 0.0  ;;  %v1033_v42 = vmul.f32 %v1027_v23, %v1006_v31  ;;  %v1008_v55 = vpop.f32.mrb[5].mxu0  ;;  %v1382_v8 = vand.u32 4294901760, %v1381_v56 }
 0x15f   : > { %6124 = vst [vmem:[#allocation94_spill] sm:$0xff] %v5028_v6  ;;  %v5036_v34 = vand.u32 4294901760, %v5028_v6  ;;  %v1062_v14 = vmax.f32 %v1056_v38, 0.0  ;;  %v1034_v4 = vmul.f32 %v1027_v23, %v1008_v55 }
 0x160   : > { %6126 = vst [vmem:[#allocation95_spill] sm:$0xff] %v5032_v37  ;;  %v5038_v57 = vmin.f32 %v1061_v12, 6.0  ;;  %v1057_v27 = vadd.f32 %v1051_v13, %v1033_v42  ;;  %v5042_v20 = vsub.f32 %v5023_v5, %v5032_v37  ;;  %v6132_v42 = vld [vmem:[#allocation26_spill] sm:$0xff] }
 0x161   : > { %v5044_v59 = vmin.f32 %v1062_v14, 6.0  ;;  %v1058_v31 = vadd.f32 %v1051_v13, %v1034_v4  ;;  %v5048_v51 = vsub.f32 %v5028_v6, %v5036_v34  ;;  %v5061_v14 = vpack.c.bf16 %v1376_v53, %v1364_v1 }
 0x162   : > { %6128 = vst [vmem:[#allocation96_spill] sm:$0xff] %v5038_v57  ;;  %v5052_v23 = vand.u32 4294901760, %v5038_v57  ;;  %v1063_v10 = vmax.f32 %v1057_v27, 0.0  ;;  %v5825_v12 = vand.u32 4294901760, %v5042_v20 }
 0x163   : > { %6129 = vst [vmem:[#allocation97_spill] sm:$0xff] %v5044_v59  ;;  %v5057_v5 = vand.u32 4294901760, %v5044_v59  ;;  %v1064_v56 = vmax.f32 %v1058_v31, 0.0  ;;  %1915 = vmatprep.mubr.f32.mxu1 %v5048_v51  ;;  %v1265_v13 = vand.u32 4294901760, %v5048_v51  ;;  %v6135_v31 = vand.u32 4294901760, %v6125_v16 }
 0x164   : > { %6131 = vst [vmem:[#allocation98_spill] sm:$0xff] %v5052_v23  ;;  %v5063_v4 = vmin.f32 %v1063_v10, 6.0  ;;  %v1272_v27 = vsub.f32 %v5042_v20, %v5825_v12  ;;  %1918 = vmatmul.mubr.f32.vlgmr.msra.gmra.mrb[0].mxu1 %v5042_v20  ;;  %v5071_v55 = vsub.f32 %v5038_v57, %v5052_v23  ;;  %v6137_v10 = vand.u32 4294901760, %v6127_v50 }
 0x165   : > { %6133 = vst [vmem:[#allocation99_spill] sm:$0xff] %v5057_v5  ;;  %v5076_v38 = vsub.f32 %v6125_v16, %v6135_v31  ;;  %v5078_v6 = vmin.f32 %v1064_v56, 6.0  ;;  %3500 = vmatpush1.bf16.msra.mxu1 %v4743_v21  ;;  %v5083_v1 = vsub.f32 %v5044_v59, %v5057_v5  ;;  %v1266_v53 = vsub.f32 %v5048_v51, %v1265_v13  ;;  %v6139_v21 = vld [vmem:[#allocation27_spill] sm:$0xff] }
 0x166   : > { %6134 = vst [vmem:[#allocation100_spill] sm:$0xff] %v5063_v4  ;;  %v1399_v12 = vsub.f32 %v6127_v50, %v6137_v10  ;;  %v5090_v57 = vand.u32 4294901760, %v5063_v4  ;;  %3502 = vmatprep.subr.bf16.mxu1 %v4749_v58  ;;  %v5094_v31 = vpack.c.bf16 %v1382_v8, %v1370_v18  ;;  %v6141_v10 = vld [vmem:[#allocation28_spill] sm:$0xff]  ;;  %v1273_v16 = vand.u32 4294901760, %v1272_v27  ;;  %v6145_v50 = vld [vmem:[#allocation29_spill] sm:$0xff] }
 0x167   : > { %6136 = vst [vmem:[#allocation101_spill] sm:$0xff] %v5078_v6  ;;  %v5098_v59 = vand.u32 4294901760, %v5078_v6  ;;  %1925 = vmatprep.mubr.f32.mxu1 %v5083_v1  ;;  %v1267_v51 = vand.u32 4294901760, %v1266_v53  ;;  %v5846_v5 = vand.u32 4294901760, %v5083_v1  ;;  %v6143_v18 = vand.u32 4294901760, %v5071_v55 }
 0x168   : > { %6138 = vst [vmem:[#allocation102_spill] sm:$0xff] %v5090_v57  ;;  %1928 = vmatmul.mubr.f32.gmra.mrb[2].mxu1 %v5071_v55  ;;  %v5106_v56 = vsub.f32 %v5063_v4, %v5090_v57  ;;  %v6144_v23 = vand.u32 4294901760, %v6130_v60  ;;  %v6146_v57 = vld [vmem:[#allocation30_spill] sm:$0xff] }
 0x169   : > { %6140 = vst [vmem:[#allocation103_spill] sm:$0xff] %v5098_v59  ;;  %v1288_v8 = vsub.f32 %v5071_v55, %v6143_v18  ;;  %3504 = vmatpush1.bf16.msra.mxu1 %v4758_v35  ;;  %1268 = vmatprep.mubr.f32.mxu0 %v1267_v51  ;;  %v5119_v27 = vsub.f32 %v5078_v6, %v5098_v59  ;;  %v6147_v35 = vand.u32 4294901760, %v6132_v42  ;;  %v6149_v59 = vld [vmem:[#allocation32_spill] sm:$0xff]  ;;  %v1400_v6 = vand.u32 4294901760, %v1399_v12 }
 0x16a   : > { %6142 = vst [vmem:[#allocation104_spill] sm:$0xff] %v5106_v56  ;;  %v5114_v58 = vsub.f32 %v6130_v60, %v6144_v23  ;;  %v1282_v53 = vsub.f32 %v5083_v1, %v5846_v5  ;;  %1274 = vmatmul.mubr.f32.vlgmr.msra.gmra.mrb[6].mxu0 %v1273_v16  ;;  %3506 = vmatprep.subr.bf16.mxu1 %v4765_v46  ;;  %v6148_v60 = vld [vmem:[#allocation31_spill] sm:$0xff]  ;;  %v6150_v16 = vand.u32 4294901760, %v6139_v21  ;;  %v6151_v23 = vand.u32 4294901760, %v6141_v10 }
 0x16b   : > { %v1405_v51 = vsub.f32 %v6132_v42, %v6147_v35  ;;  %3372 = vmatpush1.bf16.msra.mxu0 %v5014_v24  ;;  %1935 = vmatprep.mubr.f32.mxu1 %v5119_v27  ;;  %v5849_v18 = vand.u32 4294901760, %v5119_v27  ;;  %v1289_v35 = vand.u32 4294901760, %v1288_v8  ;;  %v6152_v24 = vand.u32 4294901760, %v5106_v56 }
 0x16c   : > { %v1283_v5 = vand.u32 4294901760, %v1282_v53  ;;  %v1411_v4 = vsub.f32 %v6139_v21, %v6150_v16  ;;  %v1423_v46 = vsub.f32 %v6141_v10, %v6151_v23  ;;  %1938 = vmatmul.mubr.f32.gmra.mrb[4].mxu1 %v5106_v56  ;;  %3374 = vmatprep.subr.bf16.mxu0 %v5016_v0  ;;  %v1388_v53 = vand.u32 4294901760, %v5076_v38  ;;  %v6158_v21 = vld [vmem:[#allocation34_spill] sm:$0xff] }
 0x16d   : > { %v1304_v37 = vsub.f32 %v5106_v56, %v6152_v24  ;;  %3508 = vmatpush1.bf16.msra.mxu1 %v4774_v48  ;;  %v1298_v16 = vsub.f32 %v5119_v27, %v5849_v18  ;;  %v1394_v23 = vand.u32 4294901760, %v5114_v58  ;;  %v6153_v10 = vand.u32 4294901760, %v6145_v50  ;;  %2075 = vmatprep.mubr.f32.mxu1 %v1265_v13  ;;  %v6157_v48 = vld [vmem:[#allocation33_spill] sm:$0xff]  ;;  %v6160_v56 = vld [vmem:[#allocation38_spill] sm:$0xff] }
 0x16e   : > { %1284 = vmatprep.mubr.f32.mxu0 %v1283_v5  ;;  %v6154_v8 = vand.u32 4294901760, %v6146_v57  ;;  %v6155_v38 = vand.u32 4294901760, %v6148_v60  ;;  %v6156_v12 = vand.u32 4294901760, %v6149_v59  ;;  %3510 = vmatprep.subr.bf16.mxu1 %v4781_v36  ;;  %v1412_v13 = vand.u32 4294901760, %v1411_v4  ;;  %v6162_v36 = vld [vmem:[#allocation42_spill] sm:$0xff] }
 0x16f   : > { %v1417_v0 = vsub.f32 %v6145_v50, %v6153_v10  ;;  %1290 = vmatmul.mubr.f32.gmra.mrb[8].mxu0 %v1289_v35  ;;  %v1299_v10 = vand.u32 4294901760, %v1298_v16  ;;  %v1424_v35 = vand.u32 4294901760, %v1423_v46  ;;  %v5866_v16 = vand.u32 4294901760, %v6162_v36 }
 0x170   : > { %v1429_v24 = vsub.f32 %v6146_v57, %v6154_v8  ;;  %v1435_v5 = vsub.f32 %v6148_v60, %v6155_v38  ;;  %v1447_v18 = vsub.f32 %v6149_v59, %v6156_v12  ;;  %3376 = vmatpush1.bf16.msra.mxu0 %v5018_v49  ;;  %v1406_v8 = vand.u32 4294901760, %v1405_v51  ;;  %v6159_v60 = vld [vmem:[#allocation37_spill] sm:$0xff] }
 0x171   : > { %3378 = vmatprep.subr.bf16.mxu0 %v5061_v14  ;;  %v1305_v57 = vand.u32 4294901760, %v1304_v37  ;;  %v3381_v38 = vpack.c.bf16 %v1400_v6, %v1388_v53  ;;  %v5860_v50 = vand.u32 4294901760, %v6159_v60  ;;  %v5859_v12 = vand.u32 4294901760, %v6160_v56  ;;  %3512 = vmatpush1.bf16.msra.mxu1 %v4789_v45  ;;  %v6161_v49 = vld [vmem:[#allocation41_spill] sm:$0xff]  ;;  %v6176_v45 = vld [vmem:[#allocation56_spill] sm:$0xff] }
 0x172   : > { %1300 = vmatprep.mubr.f32.mxu0 %v1299_v10  ;;  %v1418_v42 = vand.u32 4294901760, %v1417_v0  ;;  %v1430_v58 = vand.u32 4294901760, %v1429_v24  ;;  %v5864_v59 = vand.u32 4294901760, %v6161_v49  ;;  %3514 = vmatprep.subr.bf16.mxu1 %v4796_v11  ;;  %v1436_v46 = vand.u32 4294901760, %v1435_v5  ;;  %v6165_v24 = vld [vmem:[#allocation43_spill] sm:$0xff]  ;;  %v6166_v10 = vld [vmem:[#allocation44_spill] sm:$0xff] }
 0x173   : > { %1306 = vmatmul.mubr.f32.gmra.mrb[10].mxu0 %v1305_v57  ;;  %v1448_v14 = vand.u32 4294901760, %v1447_v18  ;;  %v6163_v6 = vand.u32 4294901760, %v6157_v48  ;;  %v6164_v4 = vand.u32 4294901760, %v6158_v21  ;;  %v3383_v53 = vpack.c.bf16 %v1406_v8, %v1394_v23  ;;  %v6169_v5 = vld [vmem:[#allocation50_spill] sm:$0xff]  ;;  %v6170_v11 = vld [vmem:[#allocation51_spill] sm:$0xff] }
 0x174   : > { %3380 = vmatpush1.bf16.msra.mxu0 %v5094_v31  ;;  %1697 = vmatprep.mubr.f32.mxu0 %v5036_v34  ;;  %v3385_v0 = vpack.c.bf16 %v1424_v35, %v1412_v13  ;;  %v1459_v57 = vsub.f32 %v6159_v60, %v5860_v50  ;;  %v1471_v18 = vsub.f32 %v6160_v56, %v5859_v12  ;;  %v6168_v50 = vld [vmem:[#allocation49_spill] sm:$0xff] }
 0x175   : > { %v1441_v37 = vsub.f32 %v6157_v48, %v6163_v6  ;;  %v1453_v51 = vsub.f32 %v6158_v21, %v6164_v4  ;;  %3382 = vmatprep.subr.bf16.mxu0 %v3381_v38  ;;  %3516 = vmatpush1.bf16.msra.mxu1 %v4803_v19  ;;  %v1465_v31 = vsub.f32 %v6161_v49, %v5864_v59  ;;  %v6167_v4 = vld [vmem:[#allocation48_spill] sm:$0xff] }
 0x176   : > { %v1477_v23 = vsub.f32 %v6162_v36, %v5866_v16  ;;  %3518 = vmatprep.subr.bf16.mxu1 %v4810_v22  ;;  %v3387_v8 = vpack.c.bf16 %v1430_v58, %v1418_v42  ;;  %v3389_v13 = vpack.c.bf16 %v1448_v14, %v1436_v46  ;;  %v5868_v12 = vand.u32 4294901760, %v6167_v4 }
 0x177   : > { %v1442_v35 = vand.u32 4294901760, %v1441_v37  ;;  %v1454_v38 = vand.u32 4294901760, %v1453_v51  ;;  %v1460_v59 = vand.u32 4294901760, %v1459_v57  ;;  %v1472_v49 = vand.u32 4294901760, %v1471_v18  ;;  %v6173_v37 = vld [vmem:[#allocation53_spill] sm:$0xff]  ;;  %v6175_v57 = vld [vmem:[#allocation55_spill] sm:$0xff] }
 0x178   : > { %3384 = vmatpush1.bf16.msra.mxu0 %v3383_v53  ;;  %v6171_v16 = vand.u32 4294901760, %v6165_v24  ;;  %v6172_v42 = vand.u32 4294901760, %v6166_v10  ;;  %v1466_v46 = vand.u32 4294901760, %v1465_v31  ;;  %v1478_v14 = vand.u32 4294901760, %v1477_v23  ;;  %v6174_v53 = vld [vmem:[#allocation54_spill] sm:$0xff] }
 0x179   : > { %3386 = vmatprep.subr.bf16.mxu0 %v3385_v0  ;;  %3520 = vmatpush1.bf16.msra.mxu1 %v4817_v17  ;;  %v3391_v0 = vpack.c.bf16 %v1454_v38, %v1442_v35  ;;  %v6178_v23 = vand.u32 4294901760, %v6169_v5  ;;  %v6179_v51 = vand.u32 4294901760, %v6170_v11  ;;  %v3393_v38 = vpack.c.bf16 %v1472_v49, %v1460_v59  ;;  %v6184_v49 = vld [vmem:[#allocation57_spill] sm:$0xff] }
 0x17a   : > { %v1483_v22 = vsub.f32 %v6165_v24, %v6171_v16  ;;  %v1495_v58 = vsub.f32 %v6166_v10, %v6172_v42  ;;  %3522 = vmatprep.subr.bf16.mxu1 %v4824_v39  ;;  %v1489_v16 = vsub.f32 %v6167_v4, %v5868_v12  ;;  %v6177_v42 = vand.u32 4294901760, %v6168_v50 }
 0x17b   : > { %v1507_v19 = vsub.f32 %v6169_v5, %v6178_v23  ;;  %v1519_v35 = vsub.f32 %v6170_v11, %v6179_v51  ;;  %v3395_v18 = vpack.c.bf16 %v1478_v14, %v1466_v46  ;;  %v6180_v12 = vand.u32 4294901760, %v6173_v37  ;;  %v6185_v46 = vld [vmem:[#allocation58_spill] sm:$0xff]  ;;  %v6187_v11 = vld [vmem:[#allocation60_spill] sm:$0xff] }
 0x17c   : > { %3388 = vmatpush1.bf16.msra.mxu0 %v3387_v8  ;;  %v1501_v31 = vsub.f32 %v6168_v50, %v6177_v42  ;;  %v1484_v6 = vand.u32 4294901760, %v1483_v22  ;;  %v1496_v8 = vand.u32 4294901760, %v1495_v58  ;;  %v6181_v42 = vand.u32 4294901760, %v6174_v53  ;;  %v6189_v58 = vld [vmem:[#allocation62_spill] sm:$0xff] }
 0x17d   : > { %3390 = vmatprep.subr.bf16.mxu0 %v3389_v13  ;;  %3524 = vmatpush1.bf16.msra.mxu1 %v4831_v40  ;;  %v1513_v39 = vsub.f32 %v6173_v37, %v6180_v12  ;;  %v6182_v23 = vand.u32 4294901760, %v6175_v57  ;;  %v6183_v22 = vand.u32 4294901760, %v6176_v45  ;;  %v5882_v14 = vand.u32 4294901760, %v6185_v46 }
 0x17e   : > { %v1525_v17 = vsub.f32 %v6174_v53, %v6181_v42  ;;  %3526 = vmatprep.subr.bf16.mxu1 %v4838_v41  ;;  %v1490_v12 = vand.u32 4294901760, %v1489_v16  ;;  %v1502_v51 = vand.u32 4294901760, %v1501_v31  ;;  %v1508_v40 = vand.u32 4294901760, %v1507_v19  ;;  %v6186_v41 = vld [vmem:[#allocation59_spill] sm:$0xff] }
 0x17f   : > { %v1531_v13 = vsub.f32 %v6175_v57, %v6182_v23  ;;  %v1543_v59 = vsub.f32 %v6176_v45, %v6183_v22  ;;  %v1520_v37 = vand.u32 4294901760, %v1519_v35  ;;  %v3397_v42 = vpack.c.bf16 %v1496_v8, %v1484_v6  ;;  %v6188_v22 = vld [vmem:[#allocation61_spill] sm:$0xff] }
 0x180   : > { %3392 = vmatpush1.bf16.msra.mxu0 %v3391_v0  ;;  %v5881_v53 = vand.u32 4294901760, %v6186_v41  ;;  %v5880_v5 = vand.u32 4294901760, %v6187_v11  ;;  %v1514_v23 = vand.u32 4294901760, %v1513_v39  ;;  %v1526_v57 = vand.u32 4294901760, %v1525_v17 }
 0x181   : > { %3394 = vmatprep.subr.bf16.mxu0 %v3393_v38  ;;  %3528 = vmatpush1.bf16.msra.mxu1 %v4845_v54  ;;  %v5883_v45 = vand.u32 4294901760, %v6188_v22  ;;  %v5884_v50 = vand.u32 4294901760, %v6189_v58  ;;  %v1532_v0 = vand.u32 4294901760, %v1531_v13  ;;  %v1544_v16 = vand.u32 4294901760, %v1543_v59  ;;  %v6191_v13 = vld [vmem:[#allocation63_spill] sm:$0xff] }
 0x182   : > { %3530 = vmatprep.subr.bf16.mxu1 %v4852_v7  ;;  %v6190_v19 = vand.u32 4294901760, %v6184_v49  ;;  %v1549_v31 = vsub.f32 %v6185_v46, %v5882_v14  ;;  %v3399_v35 = vpack.c.bf16 %v1502_v51, %v1490_v12  ;;  %v3401_v39 = vpack.c.bf16 %v1520_v37, %v1508_v40  ;;  %v6214_v7 = vld [vmem:[#allocation14_spill] sm:$0xff] }
 0x183   : > { %v1555_v17 = vsub.f32 %v6186_v41, %v5881_v53  ;;  %v1567_v38 = vsub.f32 %v6187_v11, %v5880_v5  ;;  %v5885_v8 = vand.u32 4294901760, %v4666_v2  ;;  %v1573_v40 = vsub.f32 %v6189_v58, %v5884_v50 }
 0x184   : > { %v1537_v6 = vsub.f32 %v6184_v49, %v6190_v19  ;;  %3396 = vmatpush1.bf16.msra.mxu0 %v3395_v18  ;;  %v1561_v18 = vsub.f32 %v6188_v22, %v5883_v45  ;;  %v3403_v37 = vpack.c.bf16 %v1526_v57, %v1514_v23  ;;  %v3405_v12 = vpack.c.bf16 %v1544_v16, %v1532_v0 }
 0x185   : > { %3398 = vmatprep.subr.bf16.mxu0 %v3397_v42  ;;  %3532 = vmatpush1.bf16.msra.mxu1 %v4859_v15  ;;  %v1550_v42 = vand.u32 4294901760, %v1549_v31  ;;  %v5886_v19 = vand.u32 4294901760, %v4685_v26  ;;  %v5887_v5 = vand.u32 4294901760, %v4690_v3  ;;  %v5891_v53 = vand.u32 4294901760, %v4701_v52  ;;  %v6209_v15 = vld [vmem:[#allocation91_spill] sm:$0xff] }
 0x186   : > { %3534 = vmatprep.subr.bf16.mxu1 %v4866_v63  ;;  %v1538_v51 = vand.u32 4294901760, %v1537_v6  ;;  %v5890_v14 = vand.u32 4294901760, %v4706_v25  ;;  %v1556_v45 = vand.u32 4294901760, %v1555_v17  ;;  %v1568_v59 = vand.u32 4294901760, %v1567_v38 }
 0x187   : > { %v1579_v50 = vsub.f32 %v4666_v2, %v5885_v8  ;;  %v6192_v57 = vand.u32 4294901760, %v6191_v13  ;;  %v1562_v0 = vand.u32 4294901760, %v1561_v18  ;;  %v1574_v16 = vand.u32 4294901760, %v1573_v40 }
 0x188   : > { %3400 = vmatpush1.bf16.msra.mxu0 %v3399_v35  ;;  %v5888_v6 = vand.u32 4294901760, %v4720_v32  ;;  %v5889_v31 = vand.u32 4294901760, %v4725_v61  ;;  %v3407_v35 = vpack.c.bf16 %v1550_v42, %v1538_v51  ;;  %v5896_v17 = vand.u32 4294901760, %v4899_v30 }
 0x189   : > { %3402 = vmatprep.subr.bf16.mxu0 %v3401_v39  ;;  %v1591_v23 = vsub.f32 %v6191_v13, %v6192_v57  ;;  %3536 = vmatpush1.bf16.msra.mxu1 %v4873_v62  ;;  %v5893_v39 = vand.u32 4294901760, %v4897_v9  ;;  %v1585_v38 = vsub.f32 %v4685_v26, %v5886_v19  ;;  %v1597_v18 = vsub.f32 %v4690_v3, %v5887_v5 }
 0x18a   : > { %3538 = vmatprep.subr.bf16.mxu1 %v4880_v28  ;;  %v1603_v40 = vsub.f32 %v4701_v52, %v5891_v53  ;;  %v1615_v51 = vsub.f32 %v4706_v25, %v5890_v14  ;;  %v3409_v42 = vpack.c.bf16 %v1568_v59, %v1556_v45  ;;  %v1580_v57 = vand.u32 4294901760, %v1579_v50  ;;  %v6193_v53 = vld [vmem:[#allocation80_spill] sm:$0xff] }
 0x18b   : > { %v3411_v8 = vpack.c.bf16 %v1574_v16, %v1562_v0  ;;  %v1609_v19 = vsub.f32 %v4720_v32, %v5888_v6  ;;  %v1621_v5 = vsub.f32 %v4725_v61, %v5889_v31  ;;  %v1639_v45 = vsub.f32 %v4899_v30, %v5896_v17  ;;  %v6195_v17 = vld [vmem:[#allocation79_spill] sm:$0xff] }
 0x18c   : > { %3404 = vmatpush1.bf16.msra.mxu0 %v3403_v37  ;;  %v1592_v37 = vand.u32 4294901760, %v1591_v23  ;;  %v5898_v59 = vand.u32 4294901760, %v4909_v44  ;;  %v1586_v23 = vand.u32 4294901760, %v1585_v38  ;;  %v1598_v0 = vand.u32 4294901760, %v1597_v18 }
 0x18d   : > { %3406 = vmatprep.subr.bf16.mxu0 %v3405_v12  ;;  %3540 = vmatpush1.bf16.msra.mxu1 %v4887_v29  ;;  %v1627_v12 = vsub.f32 %v4897_v9, %v5893_v39  ;;  %v1604_v16 = vand.u32 4294901760, %v1603_v40  ;;  %v1616_v6 = vand.u32 4294901760, %v1615_v51  ;;  %v5899_v14 = vand.u32 4294901760, %v4923_v47  ;;  %v6194_v39 = vld [vmem:[#allocation52_spill] sm:$0xff] }
 0x18e   : > { %3542 = vmatprep.subr.bf16.mxu1 %v4895_v43  ;;  %v3413_v31 = vpack.c.bf16 %v1592_v37, %v1580_v57  ;;  %v5900_v43 = vand.u32 4294901760, %v6193_v53  ;;  %v1610_v29 = vand.u32 4294901760, %v1609_v19  ;;  %v1622_v28 = vand.u32 4294901760, %v1621_v5  ;;  %v6198_v37 = vld [vmem:[#allocation83_spill] sm:$0xff] }
 0x18f   : > { %v1628_v50 = vand.u32 4294901760, %v1627_v12  ;;  %v1640_v62 = vand.u32 4294901760, %v1639_v45  ;;  %v1645_v18 = vsub.f32 %v4909_v44, %v5898_v59  ;;  %v3415_v40 = vpack.c.bf16 %v1598_v0, %v1586_v23  ;;  %v6199_v45 = vld [vmem:[#allocation85_spill] sm:$0xff] }
 0x190   : > { %3408 = vmatpush1.bf16.msra.mxu0 %v3407_v35  ;;  %v6196_v35 = vand.u32 4294901760, %v4907_v33  ;;  %v3417_v51 = vpack.c.bf16 %v1616_v6, %v1604_v16  ;;  %v5902_v19 = vand.u32 4294901760, %v6198_v37  ;;  %v1651_v5 = vsub.f32 %v4923_v47, %v5899_v14  ;;  %v6202_v6 = vld [vmem:[#allocation84_spill] sm:$0xff]  ;;  %v6204_v59 = vld [vmem:[#allocation89_spill] sm:$0xff] }
 0x191   : > { %3410 = vmatprep.subr.bf16.mxu0 %v3409_v42  ;;  %3544 = vmatpush1.bf16.msra.mxu1 %v6194_v39  ;;  %v6197_v42 = vld [vmem:[#allocation82_spill] sm:$0xff]  ;;  %v1663_v12 = vsub.f32 %v6193_v53, %v5900_v43  ;;  %v3419_v23 = vpack.c.bf16 %v1622_v28, %v1610_v29  ;;  %v3421_v0 = vpack.c.bf16 %v1640_v62, %v1628_v50  ;;  %v5907_v63 = vand.u32 4294901760, %v6204_v59 }
 0x192   : > { %3546 = vmatprep.subr.bf16.mxu1 %v6195_v17  ;;  %v1633_v38 = vsub.f32 %v4907_v33, %v6196_v35  ;;  %v5903_v57 = vand.u32 4294901760, %v6197_v42  ;;  %v6200_v17 = vld [vmem:[#allocation86_spill] sm:$0xff]  ;;  %v1669_v43 = vsub.f32 %v6198_v37, %v5902_v19  ;;  %v6203_v35 = vld [vmem:[#allocation88_spill] sm:$0xff]  ;;  %v6205_v62 = vand.u32 4294901760, %v6199_v45 }
 0x193   : > { %v5905_v39 = vand.u32 4294901760, %v6203_v35  ;;  %v6206_v29 = vand.u32 4294901760, %v6200_v17 }
 0x194   : > { %3412 = vmatpush1.bf16.msra.mxu0 %v3411_v8  ;;  %v6201_v8 = vld [vmem:[#allocation81_spill] sm:$0xff]  ;;  %v1634_v16 = vand.u32 4294901760, %v1633_v38  ;;  %v1657_v14 = vsub.f32 %v6197_v42, %v5903_v57  ;;  %v1675_v28 = vsub.f32 %v6199_v45, %v6205_v62  ;;  %v6207_v38 = vld [vmem:[#allocation87_spill] sm:$0xff]  ;;  %v1670_v57 = vand.u32 4294901760, %v1669_v43 }
 0x195   : > { %3414 = vmatprep.subr.bf16.mxu0 %v3413_v31  ;;  %3548 = vmatpush1.bf16.msra.mxu1 %v6201_v8  ;;  %v1646_v31 = vand.u32 4294901760, %v1645_v18  ;;  %v1652_v8 = vand.u32 4294901760, %v1651_v5  ;;  %v1687_v50 = vsub.f32 %v6200_v17, %v6206_v29  ;;  %v6208_v18 = vld [vmem:[#allocation90_spill] sm:$0xff]  ;;  %v1693_v5 = vsub.f32 %v6204_v59, %v5907_v63 }
 0x196   : > { %3550 = vmatprep.subr.bf16.mxu1 %v6202_v6  ;;  %v1664_v6 = vand.u32 4294901760, %v1663_v12  ;;  %v1658_v19 = vand.u32 4294901760, %v1657_v14  ;;  %v1676_v62 = vand.u32 4294901760, %v1675_v28  ;;  %v6215_v63 = vand.u32 4294901760, %v6214_v7 }
 0x197   : > { %v1688_v29 = vand.u32 4294901760, %v1687_v50  ;;  %v1694_v43 = vand.u32 4294901760, %v1693_v5  ;;  %v6219_v50 = vld [vmem:[#allocation16_spill] sm:$0xff]  ;;  %v6227_v5 = vld [vmem:[#allocation19_spill] sm:$0xff] }
 0x198   : > { %3416 = vmatpush1.bf16.msra.mxu0 %v3415_v40  ;;  %v3423_v40 = vpack.c.bf16 %v1646_v31, %v1634_v16  ;;  %v3425_v12 = vpack.c.bf16 %v1664_v6, %v1652_v8  ;;  %v6211_v31 = vld [vmem:[#allocation12_spill] sm:$0xff]  ;;  %v6217_v6 = vld [vmem:[#allocation15_spill] sm:$0xff] }
 0x199   : > { %3418 = vmatprep.subr.bf16.mxu0 %v3417_v51  ;;  %3552 = vmatpush1.bf16.msra.mxu1 %v6207_v38  ;;  %v1681_v51 = vsub.f32 %v6203_v35, %v5905_v39  ;;  %v6210_v38 = vld [vmem:[#allocation11_spill] sm:$0xff]  ;;  %v3429_v16 = vpack.c.bf16 %v1688_v29, %v1676_v62  ;;  %v6212_v39 = vld [vmem:[#allocation13_spill] sm:$0xff]  ;;  %v6216_v8 = vld [vmem:[#allocation92_spill] sm:$0xff]  ;;  %v6218_v28 = vand.u32 4294901760, %v6217_v6 }
 0x19a   : > { %3554 = vmatprep.subr.bf16.mxu1 %v6208_v18  ;;  %v6213_v18 = vand.u32 4294901760, %v6212_v39  ;;  %v6223_v39 = vld [vmem:[#allocation17_spill] sm:$0xff]  ;;  %v6229_v62 = vld [vmem:[#allocation20_spill] sm:$0xff] }
 0x19b   : > { %v1682_v14 = vand.u32 4294901760, %v1681_v51  ;;  %v6224_v7 = vand.u32 4294901760, %v6223_v39 }
 0x19c   : > { %3420 = vmatpush1.bf16.msra.mxu0 %v3419_v23  ;;  %v3427_v23 = vpack.c.bf16 %v1670_v57, %v1658_v19  ;;  %v6221_v19 = vand.u32 4294901760, %v5042_v20  ;;  %v6231_v20 = vand.u32 4294901760, %v5071_v55  ;;  %v6243_v55 = vld [vmem:[#allocation104_spill] sm:$0xff] }
 0x19d   : > { %3422 = vmatprep.subr.bf16.mxu0 %v3421_v0  ;;  %3556 = vmatpush1.bf16.msra.mxu1 %v6209_v15  ;;  %v3563_v0 = vpack.c.bf16 %v6215_v63, %v6213_v18  ;;  %v6220_v15 = vand.u32 4294901760, %v6219_v50  ;;  %v3431_v57 = vpack.c.bf16 %v1694_v43, %v1682_v14  ;;  %v6225_v63 = vld [vmem:[#allocation18_spill] sm:$0xff] }
 0x19e   : > { %3558 = vmatprep.subr.bf16.mxu1 %v6210_v38  ;;  %v6226_v18 = vand.u32 4294901760, %v6225_v63  ;;  %v6235_v43 = vld [vmem:[#allocation22_spill] sm:$0xff] }
 0x19f   : > { %v3565_v38 = vpack.c.bf16 %v6220_v15, %v6218_v28  ;;  %v6230_v15 = vand.u32 4294901760, %v6229_v62  ;;  %v6240_v28 = vld [vmem:[#allocation24_spill] sm:$0xff] }
 0x1a0   : > { %3424 = vmatpush1.bf16.msra.mxu0 %v3423_v40  ;;  %v6222_v40 = vand.u32 4294901760, %v5083_v1  ;;  %v3567_v51 = vpack.c.bf16 %v6226_v18, %v6224_v7  ;;  %v6233_v1 = vld [vmem:[#allocation21_spill] sm:$0xff]  ;;  %v6241_v50 = vand.u32 4294901760, %v6240_v28  ;;  %v6247_v7 = vld [vmem:[#allocation26_spill] sm:$0xff]  ;;  %v6252_v62 = vld [vmem:[#allocation28_spill] sm:$0xff] }
 0x1a1   : > { %3426 = vmatprep.subr.bf16.mxu0 %v3425_v12  ;;  %3560 = vmatpush1.bf16.msra.mxu1 %v6211_v31  ;;  %v6228_v12 = vand.u32 4294901760, %v6227_v5  ;;  %v6234_v14 = vand.u32 4294901760, %v6233_v1  ;;  %v6248_v63 = vand.u32 4294901760, %v6247_v7  ;;  %v6250_v5 = vld [vmem:[#allocation27_spill] sm:$0xff]  ;;  %v6262_v28 = vld [vmem:[#allocation32_spill] sm:$0xff]  ;;  %v6267_v7 = vand.u32 4294901760, %v6159_v60 }
 0x1a2   : > { %3562 = vmatprep.subr.bf16.mxu1 %v6216_v8  ;;  %v6237_v8 = vld [vmem:[#allocation95_spill] sm:$0xff] }
 0x1a3   : > { %v3569_v29 = vpack.c.bf16 %v6230_v15, %v6228_v12  ;;  %v6251_v12 = vand.u32 4294901760, %v6250_v5  ;;  %v6253_v15 = vand.u32 4294901760, %v6252_v62  ;;  %v6269_v5 = vld [vmem:[#allocation41_spill] sm:$0xff]  ;;  %v6271_v62 = vand.u32 4294901760, %v6162_v36 }
 0x1a4   : > { %3428 = vmatpush1.bf16.msra.mxu0 %v3427_v23  ;;  %2079 = vmatmul.mubr.f32.vlgmr.msra.gmra.mrb[0].mxu1 %v6221_v19  ;;  %v6232_v23 = vand.u32 4294901760, %v5119_v27  ;;  %v6242_v19 = vld [vmem:[#allocation99_spill] sm:$0xff]  ;;  %v6245_v27 = vld [vmem:[#allocation25_spill] sm:$0xff] }
 0x1a5   : > { %3430 = vmatprep.subr.bf16.mxu0 %v3429_v16  ;;  %2087 = vmatprep.mubr.f32.mxu1 %v6222_v40  ;;  %v6236_v16 = vand.u32 4294901760, %v6235_v43  ;;  %v6244_v40 = vand.u32 4294901760, %v6243_v55  ;;  %v6246_v39 = vand.u32 4294901760, %v6245_v27  ;;  %v6264_v55 = vmov 0.0   ;;  %v6281_v36 = vld [vmem:[#allocation53_spill] sm:$0xff] }
 0x1a6   : > { %3564 = vmatpush1.bf16.msra.mxu1 %v3563_v0  ;;  %v6266_v27 = vand.u32 4294901760, %v6158_v21  ;;  %v6274_v21 = vand.u32 4294901760, %v6167_v4 }
 0x1a7   : > { %3566 = vmatprep.subr.bf16.mxu1 %v3565_v38  ;;  %v3571_v0 = vpack.c.bf16 %v6236_v16, %v6234_v14  ;;  %v6238_v38 = vld [vmem:[#allocation23_spill] sm:$0xff]  ;;  %v3575_v18 = vpack.c.bf16 %v6248_v63, %v6246_v39  ;;  %v6257_v14 = vld [vmem:[#allocation30_spill] sm:$0xff]  ;;  %v6268_v63 = vand.u32 4294901760, %v6160_v56 }
 0x1a8   : > { %3432 = vmatpush1.bf16.msra.mxu0 %v3431_v57  ;;  %2091 = vmatmul.mubr.f32.gmra.mrb[2].mxu1 %v6231_v20  ;;  %v6239_v6 = vand.u32 4294901760, %v6238_v38  ;;  %v6254_v20 = vld [vmem:[#allocation103_spill] sm:$0xff]  ;;  %v6258_v43 = vand.u32 4294901760, %v6257_v14  ;;  %v6277_v56 = vld [vmem:[#allocation50_spill] sm:$0xff] }
 0x1a9   : > { %2099 = vmatprep.mubr.f32.mxu1 %v6232_v23  ;;  %v6255_v23 = vld [vmem:[#allocation29_spill] sm:$0xff]  ;;  %v6260_v38 = vld [vmem:[#allocation31_spill] sm:$0xff] }
 0x1aa   : > { %3568 = vmatpush1.bf16.msra.mxu1 %v3567_v51  ;;  %v3573_v57 = vpack.c.bf16 %v6241_v50, %v6239_v6  ;;  %v6249_v51 = vld [vmem:[#allocation98_spill] sm:$0xff]  ;;  %v6256_v1 = vand.u32 4294901760, %v6255_v23  ;;  %v6261_v6 = vand.u32 4294901760, %v6260_v38  ;;  %v6263_v50 = vand.u32 4294901760, %v6262_v28 }
 0x1ab   : > { %1699 = vmatmul.mubr.f32.vlgmr.msra.gmra.mrb[6].mxu0 %v6237_v8  ;;  %3570 = vmatprep.subr.bf16.mxu1 %v3569_v29  ;;  %v3577_v29 = vpack.c.bf16 %v6253_v15, %v6251_v12  ;;  %v6270_v12 = vand.u32 4294901760, %v6269_v5  ;;  %v6282_v28 = vand.u32 4294901760, %v6281_v36  ;;  %v6291_v5 = vand.u32 4294901760, %v6186_v41 }
 0x1ac   : > { %1705 = vmatprep.mubr.f32.mxu0 %v6242_v19  ;;  %2103 = vmatmul.mubr.f32.gmra.mrb[4].mxu1 %v6244_v40  ;;  %v3579_v16 = vpack.c.bf16 %v6258_v43, %v6256_v1  ;;  %v6265_v40 = vand.u32 4294901760, %v6157_v48  ;;  %v6273_v48 = vand.u32 4294901760, %v6166_v10  ;;  %v6275_v1 = vld [vmem:[#allocation49_spill] sm:$0xff]  ;;  %v6278_v43 = vand.u32 4294901760, %v6277_v56  ;;  %v6285_v10 = vld [vmem:[#allocation55_spill] sm:$0xff] }
 0x1ad   : > { %2366 = vmatprep.mubr.f32.mxu1 %v5036_v34  ;;  %v3587_v15 = vpack.c.bf16 %v6271_v62, %v6270_v12  ;;  %v6276_v60 = vand.u32 4294901760, %v6275_v1  ;;  %v6292_v12 = vand.u32 4294901760, %v6187_v11  ;;  %v6298_v41 = vand.u32 4294901760, %v4690_v3 }
 0x1ae   : > { %3572 = vmatpush1.bf16.msra.mxu1 %v3571_v0  ;;  %v6259_v0 = vld [vmem:[#allocation102_spill] sm:$0xff]  ;;  %v3583_v39 = vpack.c.bf16 %v6266_v27, %v6265_v40  ;;  %v6286_v40 = vand.u32 4294901760, %v6285_v10  ;;  %v6287_v27 = vld [vmem:[#allocation56_spill] sm:$0xff]  ;;  %v6299_v11 = vand.u32 4294901760, %v4701_v52  ;;  %v6305_v3 = vand.u32 4294901760, %v4907_v33  ;;  %v6326_v10 = vld [vmem:[#allocation75_spill] sm:$0xff] }
 0x1af   : > { %1707 = vmatmul.mubr.f32.gmra.mrb[8].mxu0 %v6249_v51  ;;  %3574 = vmatprep.subr.bf16.mxu1 %v3573_v57  ;;  %v3581_v57 = vpack.c.bf16 %v6263_v50, %v6261_v6  ;;  %v3591_v14 = vpack.c.bf16 %v6276_v60, %v6274_v21  ;;  %v6283_v50 = vld [vmem:[#allocation54_spill] sm:$0xff]  ;;  %v6288_v4 = vand.u32 4294901760, %v6287_v27  ;;  %v3601_v62 = vpack.c.bf16 %v6292_v12, %v6291_v5  ;;  %v6328_v27 = vld [vmem:[#allocation77_spill] sm:$0xff]  ;;  %v6336_v12 = vld [vmem:[#allocation47_spill] sm:$0xff] }
 0x1b0   : > { %1713 = vmatprep.mubr.f32.mxu0 %v6254_v20  ;;  %v6306_v52 = vand.u32 4294901760, %v4909_v44  ;;  %v6312_v33 = vand.u32 4294901760, %v6200_v17  ;;  %v6313_v44 = vand.u32 4294901760, %v6203_v35  ;;  %v6318_v17 = vld [vmem:[#allocation67_spill] sm:$0xff]  ;;  %v6321_v35 = vld [vmem:[#allocation70_spill] sm:$0xff] }
 0x1b1   : > { %v6335_v5 = vld [vmem:[#allocation46_spill] sm:$0xff] }
 0x1b2   : > { %3576 = vmatpush1.bf16.msra.mxu1 %v3575_v18  ;;  %v3585_v18 = vpack.c.bf16 %v6268_v63, %v6267_v7  ;;  %v6289_v7 = vand.u32 4294901760, %v6184_v49  ;;  %v6290_v63 = vand.u32 4294901760, %v6185_v46  ;;  %v6296_v49 = vand.u32 4294901760, %v6191_v13 }
 0x1b3   : > { %1715 = vmatmul.mubr.f32.gmra.mrb[10].mxu0 %v6259_v0  ;;  %3578 = vmatprep.subr.bf16.mxu1 %v3577_v29  ;;  %v6272_v29 = vand.u32 4294901760, %v6165_v24  ;;  %v6284_v24 = vand.u32 4294901760, %v6283_v50  ;;  %v6297_v46 = vand.u32 4294901760, %v4685_v26  ;;  %v6303_v13 = vand.u32 4294901760, %v4897_v9  ;;  %v6323_v50 = vld [vmem:[#allocation72_spill] sm:$0xff] }
 0x1b4   : > { %2732 = vmatprep.mubr.f32.mxu0 %v6264_v55  ;;  %v6304_v26 = vand.u32 4294901760, %v4899_v30  ;;  %v6310_v9 = vand.u32 4294901760, %v6198_v37  ;;  %v6311_v30 = vand.u32 4294901760, %v6199_v45  ;;  %v6317_v37 = vld [vmem:[#allocation66_spill] sm:$0xff]  ;;  %v6320_v45 = vld [vmem:[#allocation69_spill] sm:$0xff] }
 0x1b5   : > { %v3589_v23 = vpack.c.bf16 %v6273_v48, %v6272_v29  ;;  %v6294_v29 = vand.u32 4294901760, %v6189_v58  ;;  %v3607_v1 = vpack.c.bf16 %v6298_v41, %v6297_v46  ;;  %v6301_v58 = vand.u32 4294901760, %v4720_v32 }
 0x1b6   : > { %3580 = vmatpush1.bf16.msra.mxu1 %v3579_v16  ;;  %v6279_v16 = vld [vmem:[#allocation51_spill] sm:$0xff]  ;;  %v3613_v56 = vpack.c.bf16 %v6304_v26, %v6303_v13  ;;  %v6308_v32 = vand.u32 4294901760, %v6193_v53  ;;  %v6315_v53 = vld [vmem:[#allocation64_spill] sm:$0xff] }
 0x1b7   : > { %3582 = vmatprep.subr.bf16.mxu1 %v3581_v57  ;;  %v6280_v38 = vand.u32 4294901760, %v6279_v16  ;;  %v3595_v57 = vpack.c.bf16 %v6284_v24, %v6282_v28  ;;  %v6322_v28 = vld [vmem:[#allocation71_spill] sm:$0xff]  ;;  %v6324_v24 = vld [vmem:[#allocation73_spill] sm:$0xff] }
 0x1b9   : > { %v3593_v6 = vpack.c.bf16 %v6280_v38, %v6278_v43  ;;  %v3615_v43 = vpack.c.bf16 %v6306_v52, %v6305_v3 }
 0x1ba   : > { %3584 = vmatpush1.bf16.msra.mxu1 %v3583_v39  ;;  %v3597_v39 = vpack.c.bf16 %v6288_v4, %v6286_v40  ;;  %v6327_v40 = vld [vmem:[#allocation76_spill] sm:$0xff]  ;;  %v6329_v4 = vld [vmem:[#allocation78_spill] sm:$0xff] }
 0x1bb   : > { %3586 = vmatprep.subr.bf16.mxu1 %v3585_v18  ;;  %v3599_v18 = vpack.c.bf16 %v6290_v63, %v6289_v7  ;;  %v6332_v7 = vld [vmem:[#allocation39_spill] sm:$0xff]  ;;  %v6333_v63 = vld [vmem:[#allocation40_spill] sm:$0xff] }
 0x1be   : > { %3588 = vmatpush1.bf16.msra.mxu1 %v3587_v15  ;;  %v6293_v15 = vand.u32 4294901760, %v6188_v22  ;;  %v6300_v22 = vand.u32 4294901760, %v4706_v25  ;;  %v6307_v25 = vand.u32 4294901760, %v4923_v47  ;;  %v6314_v47 = vand.u32 4294901760, %v6204_v59  ;;  %v6319_v59 = vld [vmem:[#allocation68_spill] sm:$0xff] }
 0x1bf   : > { %3590 = vmatprep.subr.bf16.mxu1 %v3589_v23  ;;  %v6295_v23 = vand.u32 4294901760, %v4666_v2  ;;  %v6302_v2 = vand.u32 4294901760, %v4725_v61  ;;  %v6309_v61 = vand.u32 4294901760, %v6197_v42  ;;  %v6316_v42 = vld [vmem:[#allocation65_spill] sm:$0xff] }
 0x1c0   : > { %v3603_v48 = vpack.c.bf16 %v6294_v29, %v6293_v15  ;;  %v3609_v60 = vpack.c.bf16 %v6300_v22, %v6299_v11  ;;  %v3617_v16 = vpack.c.bf16 %v6308_v32, %v6307_v25  ;;  %v3623_v36 = vpack.c.bf16 %v6314_v47, %v6313_v44  ;;  %v6338_v15 = vld [vmem:[#allocation79_spill] sm:$0xff]  ;;  %v6339_v29 = vld [vmem:[#allocation81_spill] sm:$0xff]  ;;  %v6346_v25 = vld [vmem:[#allocation94_spill] sm:$0xff] }
 0x1c1   : > { %v3605_v21 = vpack.c.bf16 %v6296_v49, %v6295_v23  ;;  %v3619_v38 = vpack.c.bf16 %v6310_v9, %v6309_v61  ;;  %v6342_v23 = vld [vmem:[#allocation90_spill] sm:$0xff]  ;;  %v6343_v49 = vld [vmem:[#allocation91_spill] sm:$0xff]  ;;  %v2657_v9 = vld [vmem:[%s5639_s8] sm:$0xf] }
 0x1c2   : > { %3592 = vmatpush1.bf16.msra.mxu1 %v3591_v14  ;;  %v3611_v14 = vpack.c.bf16 %v6302_v2, %v6301_v58  ;;  %v2549_v58 = vpop.permute.xlu0 %2548  ;;  %v2554_v2 = vpop.permute.xlu1 %2553  ;;  %v6347_v47 = vld [vmem:[#allocation96_spill] sm:$0xff] }
 0x1c3   : > { %3594 = vmatprep.subr.bf16.mxu1 %v3593_v6  ;;  %v3621_v6 = vpack.c.bf16 %v6312_v33, %v6311_v30  ;;  %v2562_v32 = vmul.f32 %v2549_v58, %v6346_v25 }
 0x1c6   : > { %3596 = vmatpush1.bf16.msra.mxu1 %v3595_v57  ;;  %v6325_v57 = vld [vmem:[#allocation74_spill] sm:$0xff] }
 0x1c7   : > { %3598 = vmatprep.subr.bf16.mxu1 %v3597_v39  ;;  %v6331_v39 = vld [vmem:[#allocation36_spill] sm:$0xff] }
 0x1ca   : > { %3600 = vmatpush1.bf16.msra.mxu1 %v3599_v18  ;;  %v6334_v18 = vld [vmem:[#allocation45_spill] sm:$0xff] }
 0x1cb   : > { %3602 = vmatprep.subr.bf16.mxu1 %v3601_v62  ;;  %v6337_v62 = vld [vmem:[#allocation52_spill] sm:$0xff] }
 0x1ce   : > { %3604 = vmatpush1.bf16.msra.mxu1 %v3603_v48  ;;  %v6341_v48 = vld [vmem:[#allocation87_spill] sm:$0xff] }
 0x1cf   : > { %3606 = vmatprep.subr.bf16.mxu1 %v3605_v21  ;;  %v6344_v21 = vld [vmem:[#allocation11_spill] sm:$0xff] }
 0x1d2   : > { %3608 = vmatpush1.bf16.msra.mxu1 %v3607_v1 }
 0x1d3   : > { %3610 = vmatprep.subr.bf16.mxu1 %v3609_v60 }
 0x1d6   : > { %3612 = vmatpush1.bf16.msra.mxu1 %v3611_v14  ;;  %v2573_v14 = vpop.permute.xlu0 %2572 }
 0x1d7   : > { %3614 = vmatprep.subr.bf16.mxu1 %v3613_v56 }
 0x1da   : > { %3616 = vmatpush1.bf16.msra.mxu1 %v3615_v43  ;;  %v2603_v13 = vpop.permute.xlu0 %2602 }
 0x1db   : > { %3618 = vmatprep.subr.bf16.mxu1 %v3617_v16 }
 0x1de   : > { %3620 = vmatpush1.bf16.msra.mxu1 %v3619_v38 }
 0x1df   : > { %3622 = vmatprep.subr.bf16.mxu1 %v3621_v6 }
 0x1e2   : > { %3624 = vmatpush1.bf16.msra.mxu1 %v3623_v36  ;;  %v2563_v36 = vmul.f32 %v2554_v2, %v6347_v47 }
 0x1e3   : > { %3626 = vmatprep.subr.bf16.mxu1 %v6315_v53 }
 0x1e5   : > { %2368 = vmatmul.mubr.f32.vlgmr.msra.gmra.mrb[0].mxu1 %v6237_v8 }
 0x1e6   : > { %2374 = vmatprep.mubr.f32.mxu1 %v6242_v19  ;;  %3628 = vmatpush1.bf16.msra.mxu1 %v6316_v42 }
 0x1e7   : > { %3630 = vmatprep.subr.bf16.mxu1 %v6317_v37  ;;  %v2660_v37 = vsel %vm2658_vm2, %v2657_v9, 0 }
 0x1e9   : > { %2376 = vmatmul.mubr.f32.gmra.mrb[2].mxu1 %v6249_v51 }
 0x1ea   : > { %2382 = vmatprep.mubr.f32.mxu1 %v6254_v20  ;;  %3632 = vmatpush1.bf16.msra.mxu1 %v6318_v17 }
 0x1eb   : > { %3634 = vmatprep.subr.bf16.mxu1 %v6319_v59  ;;  %v6348_v59 = vld [vmem:[#allocation97_spill] sm:$0xff] }
 0x1ed   : > { %2384 = vmatmul.mubr.f32.gmra.mrb[4].mxu1 %v6259_v0 }
 0x1ee   : > { %3636 = vmatpush1.bf16.msra.mxu1 %v6320_v45  ;;  %2519 = vmatprep.mubr.f32.mxu1 %v5036_v34  ;;  %v6330_v34 = vld [vmem:[#allocation35_spill] sm:$0xff]  ;;  %v2564_v45 = vmul.f32 %v2554_v2, %v6348_v59 }
 0x1ef   : > { %3638 = vmatprep.subr.bf16.mxu1 %v6321_v35 }
 0x1f2   : > { %3640 = vmatpush1.bf16.msra.mxu1 %v6322_v28 }
 0x1f3   : > { %3642 = vmatprep.subr.bf16.mxu1 %v6323_v50 }
 0x1f6   : > { %3644 = vmatpush1.bf16.msra.mxu1 %v6324_v24 }
 0x1f7   : > { %3646 = vmatprep.subr.bf16.mxu1 %v6325_v57 }
 0x1fa   : > { %3648 = vmatpush1.bf16.msra.mxu1 %v6326_v10 }
 0x1fb   : > { %3650 = vmatprep.subr.bf16.mxu1 %v6327_v40 }
 0x1fe   : > { %3652 = vmatpush1.bf16.msra.mxu1 %v6328_v27 }
 0x1ff   : > { %3654 = vmatprep.subr.bf16.mxu1 %v6329_v4 }
 0x202   : > { %3656 = vmatpush1.bf16.msra.mxu1 %v4845_v54  ;;  %v6340_v54 = vld [vmem:[#allocation84_spill] sm:$0xff] }
 0x203   : > { %3658 = vmatprep.subr.bf16.mxu1 %v6330_v34 }
 0x206   : > { %3660 = vmatpush1.bf16.msra.mxu1 %v6331_v39 }
 0x207   : > { %3662 = vmatprep.subr.bf16.mxu1 %v6332_v7  ;;  %v5555_v7 = vand.u32 4294901760, %v2660_v37 }
 0x20a   : > { %3664 = vmatpush1.bf16.msra.mxu1 %v6333_v63 }
 0x20b   : > { %3666 = vmatprep.subr.bf16.mxu1 %v6334_v18 }
 0x20e   : > { %3668 = vmatpush1.bf16.msra.mxu1 %v6335_v5  ;;  %v6349_v5 = vld [vmem:[#allocation100_spill] sm:$0xff] }
 0x20f   : > { %3670 = vmatprep.subr.bf16.mxu1 %v6336_v12 }
 0x212   : > { %3672 = vmatpush1.bf16.msra.mxu1 %v6337_v62 }
 0x213   : > { %3674 = vmatprep.subr.bf16.mxu1 %v6338_v15 }
 0x216   : > { %3676 = vmatpush1.bf16.msra.mxu1 %v6339_v29  ;;  %v6350_v29 = vld [vmem:[#allocation101_spill] sm:$0xff] }
 0x217   : > { %3678 = vmatprep.subr.bf16.mxu1 %v6340_v54 }
 0x21a   : > { %3680 = vmatpush1.bf16.msra.mxu1 %v6341_v48 }
 0x21b   : > { %3682 = vmatprep.subr.bf16.mxu1 %v6342_v23 }
 0x21e   : > { %3684 = vmatpush1.bf16.msra.mxu1 %v6343_v49 }
 0x21f   : > { %3686 = vmatprep.subr.bf16.mxu1 %v6344_v21 }
 0x222   : > { %3688 = vmatpush1.bf16.msra.mxu1 %v6211_v31  ;;  %v2578_v31 = vpop.permute.xlu1 %2577 }
 0x225   : > { %2521 = vmatmul.mubr.f32.vlgmr.msra.gmra.mrb[0].mxu1 %v6237_v8 }
 0x226   : > { %2527 = vmatprep.mubr.f32.mxu1 %v6242_v19  ;;  %v2608_v8 = vpop.permute.xlu1 %2607 }
 0x229   : > { %2529 = vmatmul.mubr.f32.gmra.mrb[2].mxu1 %v6249_v51  ;;  %v2559_v51 = vpop.permute.xlu0 %2558 }
 0x22a   : > { %2535 = vmatprep.mubr.f32.mxu1 %v6254_v20  ;;  %v6345_v20 = vld [vmem:[#allocation93_spill] sm:$0xff]  ;;  %v2583_v43 = vpop.permute.xlu1 %2582  ;;  %v2565_v12 = vmul.f32 %v2559_v51, %v6349_v5  ;;  %v2566_v54 = vmul.f32 %v2559_v51, %v6350_v29 }
 0x22b   : > { %v2561_v52 = vmul.f32 %v2549_v58, %v6345_v20 }
 0x22d   : > { %2537 = vmatmul.mubr.f32.gmra.mrb[4].mxu1 %v6259_v0  ;;  %v2627_v17 = vpop.permute.xlu0 %2626 }
 0x22e   : > { %v2632_v27 = vpop.permute.xlu1 %2631 }
 0x27e   : > { %v1700_v46 = vpop.f32.mrb[6].mxu0 }
 0x27f   : > { %v1702_v41 = vpop.f32.mrb[7].mxu0 }
 0x282   : > { %v1708_v1 = vpop.f32.mrb[8].mxu0 }
 0x283   : > { %v1710_v11 = vpop.f32.mrb[9].mxu0 }
 0x286   : > { %v1716_v22 = vpop.f32.mrb[10].mxu0 }
 0x287   : > { %v1718_v60 = vpop.f32.mrb[11].mxu0 }
 0x2f8   : > { %v2522_v26 = vpop.f32.mrb[0].mxu1 }
 0x2f9   : > { %v3713_v19 = vadd.f32 %v2522_v26, %v1700_v46  ;;  %v2524_v56 = vpop.f32.mrb[1].mxu1 }
 0x2fa   : > { %v3714_v3 = vadd.f32 %v2524_v56, %v1702_v41  ;;  %v2613_v41 = vpop.permute.xlu0 %2612 }
 0x2fb   : > { %v2585_v0 = vmul.f32 %v3713_v19, %v2573_v14 }
 0x2fc   : > { %v2586_v16 = vmul.f32 %v3714_v3, %v2573_v14  ;;  %v2530_v61 = vpop.f32.mrb[2].mxu1 }
 0x2fd   : > { %v2591_v38 = vadd.f32 %v2585_v0, %v2561_v52  ;;  %v3715_v30 = vadd.f32 %v2530_v61, %v1708_v1  ;;  %v2532_v33 = vpop.f32.mrb[3].mxu1 }
 0x2fe   : > { %v2592_v6 = vadd.f32 %v2586_v16, %v2562_v32  ;;  %v3716_v44 = vadd.f32 %v2532_v33, %v1710_v11 }
 0x2ff   : > { %v2615_v53 = vmul.f32 %v2603_v13, %v2591_v38  ;;  %v2587_v42 = vmul.f32 %v3715_v30, %v2578_v31 }
 0x300   : > { %v2616_v35 = vmul.f32 %v2603_v13, %v2592_v6  ;;  %v2588_v28 = vmul.f32 %v3716_v44, %v2578_v31  ;;  %v2538_v50 = vpop.f32.mrb[4].mxu1  ;;  %v2637_v31 = vpop.permute.xlu1 %2636 }
 0x301   : > { %v2639_v24 = vadd.f32 %v2627_v17, %v2615_v53  ;;  %v2593_v57 = vadd.f32 %v2587_v42, %v2563_v36  ;;  %v3717_v10 = vadd.f32 %v2538_v50, %v1716_v22  ;;  %v2540_v40 = vpop.f32.mrb[5].mxu1 }
 0x302   : > { %v2640_v4 = vadd.f32 %v2627_v17, %v2616_v35  ;;  %v2594_v34 = vadd.f32 %v2588_v28, %v2564_v45  ;;  %v3718_v39 = vadd.f32 %v2540_v40, %v1718_v60  ;;  %v5560_v60 = vsub.f32 %v2660_v37, %v5555_v7 }
 0x303   : > { %v2645_v63 = vmax.f32 %v2639_v24, 0.0  ;;  %v2617_v18 = vmul.f32 %v2608_v8, %v2593_v57  ;;  %v2589_v62 = vmul.f32 %v3717_v10, %v2583_v43 }
 0x304   : > { %v2618_v15 = vmul.f32 %v2608_v8, %v2594_v34  ;;  %v2590_v48 = vmul.f32 %v3718_v39, %v2583_v43  ;;  %v2646_v23 = vmax.f32 %v2640_v4, 0.0  ;;  %v2735_v0 = vand.u32 4294901760, %v5560_v60 }
 0x305   : > { %v2651_v49 = vmin.f32 %v2645_v63, 6.0  ;;  %v2641_v21 = vadd.f32 %v2632_v27, %v2617_v18  ;;  %v2595_v46 = vadd.f32 %v2589_v62, %v2565_v12 }
 0x306   : > { %v2642_v1 = vadd.f32 %v2632_v27, %v2618_v15  ;;  %v2596_v11 = vadd.f32 %v2590_v48, %v2566_v54  ;;  %v2652_v22 = vmin.f32 %v2646_v23, 6.0  ;;  %v2736_v36 = vsub.f32 %v5560_v60, %v2735_v0 }
 0x307   : > { %v2647_v58 = vmax.f32 %v2641_v21, 0.0  ;;  %v2619_v2 = vmul.f32 %v2613_v41, %v2595_v46  ;;  %v2664_v14 = vand.u32 4294901760, %v2651_v49 }
 0x308   : > { %v2620_v13 = vmul.f32 %v2613_v41, %v2596_v11  ;;  %v2648_v8 = vmax.f32 %v2642_v1, 0.0  ;;  %v2662_v26 = vand.u32 4294901760, %v2652_v22  ;;  %v2737_v10 = vand.u32 4294901760, %v2736_v36  ;;  %v3191_v1 = vpop.permute.xlu1 %3190 }
 0x309   : > { %v2653_v19 = vmin.f32 %v2647_v58, 6.0  ;;  %v2643_v56 = vadd.f32 %v2637_v31, %v2619_v2  ;;  %v2751_v51 = vsub.f32 %v2651_v49, %v2664_v14  ;;  %v3183_v49 = vpop.permute.xlu0 %3182  ;;  %v3840_v58 = vld [vmem:[%s4097_s18] sm:$0xff]  ;;  %s3869_s18 = scalar_lea.vmem %s5591_s19, 128 }
 0x30a   : > { %v2644_v3 = vadd.f32 %v2637_v31, %v2620_v13  ;;  %v2654_v20 = vmin.f32 %v2648_v8, 6.0  ;;  %v2745_v52 = vsub.f32 %v2652_v22, %v2662_v26  ;;  %p3870_p6 = scmp.ne.s32.totalorder %s5591_s19, %s3869_s18  ;;  %p3877_p3 = scmp.lt.s32.totalorder %s3875_s15, %s3869_s18 }
 0x30b   : > { %v2649_v43 = vmax.f32 %v2643_v56, 0.0  ;;  %v2668_v25 = vand.u32 4294901760, %v2653_v19  ;;  %v2752_v32 = vand.u32 4294901760, %v2751_v51 }
 0x30c   : > { %v2650_v16 = vmax.f32 %v2644_v3, 0.0  ;;  %v2666_v61 = vand.u32 4294901760, %v2654_v20  ;;  %v2746_v9 = vand.u32 4294901760, %v2745_v52  ;;  %p3871_p10 = pnand %p3870_p6, %p6352_p9  ;;  %p3878_p4 = por %p3877_p3, %p3876_p2 }
 0x30d   : > { %v5563_v38 = vpack.c.bf16 %v2668_v25, %v2664_v14  ;;  %v2763_v30 = vsub.f32 %v2653_v19, %v2668_v25  ;;  %v2655_v33 = vmin.f32 %v2649_v43, 6.0  ;;  %v2753_v42 = vsub.f32 %v2751_v51, %v2752_v32 }
 0x30e   : > { %v3689_v6 = vpack.c.bf16 %v2666_v61, %v2662_v26  ;;  %v2757_v44 = vsub.f32 %v2654_v20, %v2666_v61  ;;  %v2656_v47 = vmin.f32 %v2650_v16, 6.0  ;;  %v2747_v45 = vsub.f32 %v2745_v52, %v2746_v9  ;;  %p3872_p12 = pneg %p3871_p10 }
 0x30f   : > { %v2672_v53 = vand.u32 4294901760, %v2655_v33  ;;  %v2764_v37 = vand.u32 4294901760, %v2763_v30  ;;  %v3699_v17 = vpack.c.bf16 %v2763_v30, %v2751_v51  ;;  %v2754_v34 = vand.u32 4294901760, %v2753_v42 }
 0x310   : > { %3690 = vmatprep.subr.bf16.mxu0 %v3689_v6  ;;  %v2670_v59 = vand.u32 4294901760, %v2656_v47  ;;  %v2758_v35 = vand.u32 4294901760, %v2757_v44  ;;  %v3697_v28 = vpack.c.bf16 %v2757_v44, %v2745_v52  ;;  %v2748_v18 = vand.u32 4294901760, %v2747_v45  ;;  %p3879_p7 = pnand %p3878_p4, %p3872_p12 }
 0x311   : > { %3692 = vmatpush1.bf16.msra.mxu0 %v5563_v38  ;;  %v2775_v50 = vsub.f32 %v2655_v33, %v2672_v53  ;;  %v2765_v24 = vsub.f32 %v2763_v30, %v2764_v37  ;;  %v3707_v57 = vpack.c.bf16 %v2764_v37, %v2752_v32 }
 0x312   : > { %2671 = vmatprep.subr.mxu0 %v2670_v59  ;;  %v2759_v40 = vsub.f32 %v2757_v44, %v2758_v35  ;;  %v2769_v27 = vsub.f32 %v2656_v47, %v2670_v59  ;;  %v3705_v4 = vpack.c.bf16 %v2758_v35, %v2746_v9 }
 0x313   : > { %v2766_v39 = vand.u32 4294901760, %v2765_v24  ;;  %v2776_v63 = vand.u32 4294901760, %v2775_v50 }
 0x314   : > { %v2760_v5 = vand.u32 4294901760, %v2759_v40  ;;  %v2770_v12 = vand.u32 4294901760, %v2769_v27 }
 0x315   : > { %2673 = vmatpush1.msra.mxu0 %v2672_v53  ;;  %v3695_v62 = vpack.c.bf16 %v2766_v39, %v2754_v34  ;;  %v2777_v54 = vsub.f32 %v2775_v50, %v2776_v63 }
 0x316   : > { %2738 = vmatmul.mubr.f32.vlgmr.msra.gmra.mrb[12].mxu0 %v2737_v10  ;;  %v3693_v15 = vpack.c.bf16 %v2760_v5, %v2748_v18  ;;  %v2771_v29 = vsub.f32 %v2769_v27, %v2770_v12 }
 0x317   : > { %2838 = vmatprep.mubr.f32.mxu0 %v6264_v55  ;;  %v2778_v23 = vand.u32 4294901760, %v2777_v54 }
 0x318   : > { %3694 = vmatprep.subr.bf16.mxu0 %v3693_v15  ;;  %v2772_v48 = vand.u32 4294901760, %v2771_v29 }
 0x319   : > { %3696 = vmatpush1.bf16.msra.mxu0 %v3695_v62 }
 0x31a   : > { %2773 = vmatprep.subr.mxu0 %v2772_v48 }
 0x31d   : > { %2779 = vmatpush1.msra.mxu0 %v2778_v23 }
 0x31e   : > { %2840 = vmatmul.mubr.f32.vlgmr.msra.gmra.mrb[12].mxu0 %v5555_v7  ;;  %3698 = vmatprep.subr.bf16.mxu0 %v3697_v28 }
 0x31f   : > { %3700 = vmatpush1.bf16.msra.mxu0 %v3699_v17  ;;  %2922 = vmatprep.mubr.f32.mxu0 %v6264_v55 }
 0x320   : > { %2860 = vmatprep.subr.mxu0 %v2769_v27 }
 0x323   : > { %2863 = vmatpush1.msra.mxu0 %v2775_v50 }
 0x324   : > { %3702 = vmatprep.subr.bf16.mxu0 %v3689_v6 }
 0x326   : > { %2925 = vmatmul.mubr.f32.vlgmr.msra.gmra.mrb[12].mxu0 %v5560_v60 }
 0x327   : > { %3704 = vmatpush1.bf16.msra.mxu0 %v5563_v38  ;;  %3001 = vmatprep.mubr.f32.mxu0 %v6264_v55 }
 0x328   : > { %2940 = vmatprep.subr.mxu0 %v2670_v59 }
 0x32b   : > { %2942 = vmatpush1.msra.mxu0 %v2672_v53 }
 0x32c   : > { %3706 = vmatprep.subr.bf16.mxu0 %v3705_v4 }
 0x32e   : > { %3005 = vmatmul.mubr.f32.vlgmr.msra.gmra.mrb[12].mxu0 %v2735_v0 }
 0x32f   : > { %3708 = vmatpush1.bf16.msra.mxu0 %v3707_v57  ;;  %3093 = vmatprep.mubr.f32.mxu0 %v6264_v55 }
 0x330   : > { %3030 = vmatprep.subr.mxu0 %v2770_v12 }
 0x333   : > { %3034 = vmatpush1.msra.mxu0 %v2776_v63 }
 0x334   : > { %3710 = vmatprep.subr.bf16.mxu0 %v3689_v6 }
 0x336   : > { %3095 = vmatmul.mubr.f32.vlgmr.msra.gmra.mrb[12].mxu0 %v5555_v7 }
 0x337   : > { %3712 = vmatpush1.bf16.msra.mxu0 %v5563_v38  ;;  %3171 = vmatprep.mubr.f32.mxu0 %v6264_v55  ;;  %v6351_v55 = vld [vmem:[#allocation10_spill] sm:$0xff] }
 0x338   : > { %3110 = vmatprep.subr.mxu0 %v2670_v59 }
 0x33b   : > { %3112 = vmatpush1.msra.mxu0 %v2672_v53 }
 0x33e   : > { %3173 = vmatmul.mubr.f32.vlgmr.msra.gmra.mrb[12].mxu0 %v5555_v7 }
 0x411   : > { %v3174_v21 = vpop.f32.mrb[12].mxu0 }
 0x412   : > { %v3185_v46 = vmul.f32 %v3183_v49, %v3174_v21  ;;  %v3176_v41 = vpop.f32.mrb[13].mxu0 }
 0x413   : > { %v3186_v11 = vmul.f32 %v3183_v49, %v3176_v41 }
 0x414   : > { %v3193_v22 = vadd.f32 %v3191_v1, %v3185_v46 }
 0x415   : > { %v3194_v60 = vadd.f32 %v3191_v1, %v3186_v11 }
 0x416   : > { %v3196_v2 = vadd.f32 %v3840_v58, %v3193_v22 }
 0x417   : > { %v3197_v14 = vadd.f32 %v3194_v60, %v6351_v55 }
 0x419   : > { %v3200_v31 = vcombine.low %v3196_v2, %v3197_v14 }
 0x41b   : > { %3202 = vst [vmem:[%s421_s16] sm:$0xff] %v3200_v31 }
 0x41c   : > { %3882 = shalt.err (!%p3879_p7)
}
 0x41d   : > { %s3883_s17 = scalar_lea.hbm %s5589_s29, 128  ;;  %s3887_s20 = scalar_lea.hbm %s5643_s12, 256 }
 0x41e   : > { %p3884_p8 = scmp.ne.s32.totalorder %s5589_s29, %s3883_s17  ;;  %p3888_p1 = scmp.lt.u32.totalorder %s5589_s29, %s5643_s12 }
 0x41f   : > { %p3889_p0 = scmp.lt.u32.totalorder %s3887_s20, %s3883_s17  ;;  %p3891_p6 = scmp.lt.u32.totalorder %s3883_s17, %s5589_s29 }
 0x420   : > { %p3885_p11 = pnand %p3884_p8, %p6352_p9 }
 0x421   : > { %p3890_p5 = por %p3889_p0, %p3888_p1 }
 0x422   : > { %p3886_p13 = pneg %p3885_p11 }
 0x423   : > { %p3892_p10 = por %p3891_p6, %p3890_p5 }
 0x425   : > { %p3893_p12 = pnand %p3892_p10, %p3886_p13 }
 0x427   : > { %3896 = shalt.err (!%p3893_p12)
}
 0x428   : > { %3787 = dma.vmem_to_hbm [thread:$0]  (%p6352_p9), %s5591_s19, 128, %s5589_s29, %s3204_s23  }
 0x429 PF: > { %p3799_p2 = scmp.ge.s32.totalorder %s3935_s24, 2  ;;  %s3230_s18 = sand.u32 1, %s3923_s21  }
 0x42a   : > { %p6353_p3 = scmp.ne.s32.totalorder %s5911_s14, 0  ;;  %s3231_s30 = scalar_lea.sflag [#allocation4], %s3230_s18 }
 0x42c   : > { %p3794_p4 = pnand %p3799_p2, %p6353_p3 }
 0x42e   : > { %3918 = dma.done.wait (!%p3794_p4), %s3231_s30, 128  }
 0x42f   : > { %3920 = vsyncadd (!%p3794_p4), %s3231_s30, 4294967168  ;;  %s6354_s15 = sld [smem:[#allocation8_spill]]  ;;  %s6355_s23 = sld [smem:[#allocation9_spill]] }
 0x430   : > { %p23_p7 = scmp.ge.s32.totalorder %s4033_s27, 4   ;;  %s6356_s21 = smov %s3927_s22 }
 0x431   : > { %s6358_s24 = smov %s4033_s27 }
 0x432   :  { %25 = sbr.rel (!%p23_p7) target bundleno = 4 (0x4), region = 108 }
 0x435   : > { %s6357_s22 = smov %s6354_s15 }
 0x439   :  { %3236 = vsyncpa [#allocation3], 1 }
 0x43a   :  { %3238 = vsyncpa [#allocation3 + $0x1], 1 }
 0x43b   :  { %3239 = vsyncpa [#allocation4], 1 }
 0x43c   :  { %3241 = vsyncpa [#allocation4 + $0x1], 1 }

</bundles_post_ra>
